<compile_context>
chip_gen: v5e
topology: v5e:2x2
jax: 0.10.0
libtpu: 0.0.40
codegen_flags: <defaults>
</compile_context>

<pallas_src>
import functools

import jax
import jax.numpy as jnp
from jax.experimental import pallas as pl
from jax.experimental.pallas import tpu as pltpu

# MXU operand dtype (f32 accumulate via preferred_element_type); elementwise
# math (softmax / layernorm / residuals) stays f32 (safe on v5e: no bf16 VPU).
MXU_DTYPE = jnp.bfloat16
_NEG_INF = -1e30
_LANE = 128        # lane-pad packed slabs to full 128-lane vregs
_ROW_ALIGN = 16    # bf16 sublane tile height


def _round_up(x, m):
    return (x + m - 1) // m * m


def _build_row_layout(shapes, row_align):
    """shapes: [(name, rows, cols)] -> ({name: (row_off, rows, cols)}, total_rows)."""
    layout = {}
    off = 0
    for name, r, c in shapes:
        layout[name] = (off, r, c)
        off += _round_up(r, row_align)
    return layout, _round_up(max(off, row_align), row_align)


# --------------------------------------------------------------------------
# Fused kernel: all heads, both attention stages, FFNs, LayerNorms, cls.
# --------------------------------------------------------------------------
def _thtn_fused_kernel(
    xin_ref,        # (N, Din+Deig)  bf16   [v_feat | eign_vec]
    e_feat_ref,     # (E, De)        f32
    gcn_ref,        # (N, Dv)        f32    shared gcn_model output
    bias_in_ref,    # (E, N)         f32    'in'  bias, -1e30 where non-incident
    bias_con_ref,   # (N, E)         f32    'con' bias, -1e30 where non-incident
    extra_ref,      # (H, N, Dv)     f32    cs_emb + un_emb + b_vtx1 + b_eig
    wpack_ref,      # (H, Rw, 128)   bf16   packed projection weights
    bpack_ref,      # (H, Rb, 128)   f32    packed biases / gamma / beta
    o_ref,          # (N, H*C)       f32    merge='cat' layout
    *, num_heads, query_dim, num_class, w_layout, b_layout):

    f32 = jnp.float32

    def mm(a, w):   # (R,K)@(K,M) -> (R,M); bf16 operands, f32 accumulate
        return jax.lax.dot_general(
            a.astype(MXU_DTYPE), w.astype(MXU_DTYPE),
            dimension_numbers=(((1,), (0,)), ((), ())),
            preferred_element_type=f32)

    def mm_nt(a, b):  # (R,D),(C,D) -> (R,C); contract last dims, no k.T relayout
        return jax.lax.dot_general(
            a.astype(MXU_DTYPE), b.astype(MXU_DTYPE),
            dimension_numbers=(((1,), (1,)), ((), ())),
            preferred_element_type=f32)

    def layer_norm(y, g, beta):  # torch.nn.LayerNorm, eps=1e-5
        mu = jnp.mean(y, axis=-1, keepdims=True)
        var = jnp.mean((y - mu) * (y - mu), axis=-1, keepdims=True)
        return (y - mu) * jax.lax.rsqrt(var + 1e-5) * g + beta

    def attention(q_scaled, kv, bias_masked, approx_recip):
        # softmax_over_incident( leaky_relu(q.k)/sqrt(Dq) + centrality_bias )
        # 1/sqrt(Dq) already folded into q_scaled (leaky_relu pos.-homogeneous).
        k = kv[:, :query_dim]
        v = kv[:, query_dim:]
        s = mm_nt(q_scaled, k)                       # (R, C) f32
        s = jnp.maximum(s, 0.01 * s)                 # F.leaky_relu (slope 0.01)
        s = s + bias_masked                          # -1e30 at non-incident
        m = jnp.max(s, axis=-1, keepdims=True)
        p = jnp.exp(s - m)
        denom = jnp.sum(p, axis=-1, keepdims=True)   # >= 1 always
        p = p * pl.reciprocal(denom, approx=approx_recip)
        out = mm(p, v)
        # dst rows with no incident src never receive messages (DGL); zero them.
        has_nbr = (m > 0.5 * _NEG_INF).astype(f32)
        return out * has_nbr

    xin = xin_ref[...]
    feat_e0 = e_feat_ref[...]
    gcn = gcn_ref[...]
    bias_in = bias_in_ref[...]
    bias_con = bias_con_ref[...]

    for h in range(num_heads):                       # static, small H
        def W(name, _h=h):                           # static slab slice (view)
            off, r, c = w_layout[name]
            return wpack_ref[_h, off:off + r, :c]

        def B(name, _h=h):
            row, c = b_layout[name]
            return bpack_ref[_h, row:row + 1, :c]    # (1, c)

        # ---- node feature assembly (first_layer branch, one fused matmul) ----
        feat_v = mm(xin, W("w_feat")) + gcn + extra_ref[h]            # (N, Dv)

        # ---- stage 1: node -> edge attention ('in' etype) ----
        kv_in = mm(feat_v, W("w_kvv_in")) + B("b_kvv_in")             # (N, Dq+De)
        q_e = mm(feat_e0, W("w_qe")) + B("b_qe")                      # (E, Dq)
        feat_e_t = attention(q_e, kv_in, bias_in, approx_recip=True)  # (E, De)
        g1, beta1 = B("g1"), B("beta1")
        feat_e_an = layer_norm(feat_e_t + feat_e0, g1, beta1)
        t1 = jnp.maximum(mm(feat_e_an, W("w_l1")) + B("b_l1"), 0.0)   # ffn1 relu
        feat_e_ffn = mm(t1, W("w_l2")) + B("b_l2")                    # dropout=id (eval)
        feat_e2 = layer_norm(feat_e_ffn + feat_e_an, g1, beta1)

        # ---- stage 2: edge -> node attention ('con' etype) ----
        kv_con = mm(feat_e2, W("w_kvv_con")) + B("b_kvv_con")         # (E, Dq+Dv)
        q_v = mm(feat_v, W("w_qv")) + B("b_qv")                       # (N, Dq)
        feat_v_t = attention(q_v, kv_con, bias_con, approx_recip=False)
        g2, beta2 = B("g2"), B("beta2")
        feat_v_an = layer_norm(feat_v_t + feat_v, g2, beta2)
        t2 = jnp.maximum(mm(feat_v_an, W("w_l3")) + B("b_l3"), 0.0)   # ffn2 relu
        feat_v_ffn = mm(t2, W("w_l4")) + B("b_l4")
        feat_v2 = layer_norm(feat_v_ffn + feat_v_an, g2, beta2)

        # ---- last_layer=True: dropout(identity, eval) + cls; write column band ----
        o_ref[:, h * num_class:(h + 1) * num_class] = (
            mm(feat_v2, W("w_cls")) + B("b_cls"))


# --------------------------------------------------------------------------
# Multi_head_attn forward (first_layer=True, last_layer=True), fully fused
# --------------------------------------------------------------------------
def multi_head_attn_forward(head_params, v_feat, e_feat, cs_idx, un_idx,
                            eign_vec, gcn_out, mask_in, bias_in, mask_con,
                            bias_con, query_dim, merge="cat"):
    H = len(head_params)
    N, Din = v_feat.shape
    E, De = e_feat.shape
    Deig = eign_vec.shape[1]
    Dv = head_params[0]["w_vtx1"].shape[1]
    Dq = int(query_dim)
    C = head_params[0]["w_cls"].shape[1]
    scale = 1.0 / (float(Dq) ** 0.5)

    # ---- packed slab layouts (identical for every head) ----
    w_shapes = [
        ("w_feat", Din + Deig, Dv),       # [w_vtx1 ; w_eig]
        ("w_kvv_in", Dv, Dq + De),        # [kv_lin | vv_lin]
        ("w_qe", De, Dq),                 # pre-scaled by 1/sqrt(Dq)
        ("w_kvv_con", De, Dq + Dv),       # [ke_lin | ve_lin]
        ("w_qv", Dv, Dq),                 # pre-scaled by 1/sqrt(Dq)
        ("w_l1", Dv, Dq), ("w_l2", Dq, Dv),
        ("w_l3", Dv, Dq), ("w_l4", Dq, Dv),
        ("w_cls", Dv, C),
    ]
    lane = _round_up(max(c for _, _, c in w_shapes), _LANE)
    w_layout, w_rows = _build_row_layout(w_shapes, _ROW_ALIGN)

    b_names = [("b_kvv_in", Dq + De), ("b_qe", Dq), ("b_kvv_con", Dq + Dv),
               ("b_qv", Dq), ("g1", Dv), ("beta1", Dv), ("g2", Dv), ("beta2", Dv),
               ("b_l1", Dq), ("b_l2", Dv), ("b_l3", Dq), ("b_l4", Dv), ("b_cls", C)]
    b_layout = {name: (i, d) for i, (name, d) in enumerate(b_names)}
    b_rows = _round_up(len(b_names), 8)

    def head_w_mats(p):
        return {
            "w_feat": jnp.concatenate([p["w_vtx1"], p["w_eig"]], axis=0),
            "w_kvv_in": jnp.concatenate([p["w_kv"], p["w_vv"]], axis=1),
            "w_qe": p["w_qe"] * scale,
            "w_kvv_con": jnp.concatenate([p["w_ke"], p["w_ve"]], axis=1),
            "w_qv": p["w_qv"] * scale,
            "w_l1": p["w_l1"], "w_l2": p["w_l2"],
            "w_l3": p["w_l3"], "w_l4": p["w_l4"],
            "w_cls": p["w_cls"],
        }

    def head_b_vecs(p):
        return {
            "b_kvv_in": jnp.concatenate([p["b_kv"], p["b_vv"]]),
            "b_qe": p["b_qe"] * scale,
            "b_kvv_con": jnp.concatenate([p["b_ke"], p["b_ve"]]),
            "b_qv": p["b_qv"] * scale,
            "g1": p["g1"], "beta1": p["beta1"], "g2": p["g2"], "beta2": p["beta2"],
            "b_l1": p["b_l1"], "b_l2": p["b_l2"], "b_l3": p["b_l3"], "b_l4": p["b_l4"],
            "b_cls": p["b_cls"],
        }

    def pack_head_w(p):
        mats = head_w_mats(p)
        slab = jnp.zeros((w_rows, lane), jnp.float32)
        for name, (off, r, c) in w_layout.items():
            slab = slab.at[off:off + r, :c].set(mats[name].astype(jnp.float32))
        return slab.astype(MXU_DTYPE)    # bf16 host-side: halves weight DMA bytes

    def pack_head_b(p):
        vecs = head_b_vecs(p)
        slab = jnp.zeros((b_rows, lane), jnp.float32)
        for name, (row, c) in b_layout.items():
            slab = slab.at[row, :c].set(vecs[name].astype(jnp.float32))
        return slab

    wpack = jnp.stack([pack_head_w(p) for p in head_params], axis=0)   # (H,Rw,lane) bf16
    bpack = jnp.stack([pack_head_b(p) for p in head_params], axis=0)   # (H,Rb,lane) f32
    # Per-head node additive (gcn_out is NOT replicated; it is shared below).
    extra = jnp.stack([p["cs_table"][cs_idx] + p["un_table"][un_idx]
                       + p["b_vtx1"][None, :] + p["b_eig"][None, :]
                       for p in head_params], axis=0).astype(jnp.float32)

    xin = jnp.concatenate([v_feat, eign_vec], axis=1).astype(MXU_DTYPE)
    # Fold incidence mask into the centrality bias (masked softmax, one operand).
    bias_in_m = jnp.where(mask_in > 0.0, bias_in, _NEG_INF).astype(jnp.float32)
    bias_con_m = jnp.where(mask_con > 0.0, bias_con, _NEG_INF).astype(jnp.float32)

    args = (xin, e_feat.astype(jnp.float32), gcn_out.astype(jnp.float32),
            bias_in_m, bias_con_m, extra, wpack, bpack)

    kern = functools.partial(_thtn_fused_kernel, num_heads=H, query_dim=Dq,
                             num_class=C, w_layout=w_layout, b_layout=b_layout)
    vmem_spec = pl.BlockSpec(memory_space=pltpu.MemorySpace.VMEM)
    out = pl.pallas_call(
        kern,
        out_shape=jax.ShapeDtypeStruct((N, H * C), jnp.float32),
        in_specs=[vmem_spec] * len(args),
        out_specs=vmem_spec,
        compiler_params=pltpu.CompilerParams(
            vmem_limit_bytes=32 * 1024 * 1024),   # explicit; trivial at these sizes
    )(*args)

    if merge == "cat":
        return out            # already torch.cat(head_outs, dim=1) layout
    # torch.mean(torch.stack(head_outs)) reduces to a scalar (reference semantics)
    return jnp.mean(out)


# --------------------------------------------------------------------------
# Deterministic parameter construction
# --------------------------------------------------------------------------
def make_head_params(key, input_dim, query_dim, vertex_dim, edge_dim, eig_dim,
                     n_centrality, n_uniqueness, LEN, num_class):
    ks = jax.random.split(key, 32)
    it = iter(range(32))

    def lin(kw, kb, din, dout):
        w = jax.random.normal(kw, (din, dout), jnp.float32) * 0.1
        b = jax.random.normal(kb, (dout,), jnp.float32) * 0.01
        return w, b

    p = {}
    p["w_vtx1"], p["b_vtx1"] = lin(ks[next(it)], ks[next(it)], input_dim, vertex_dim)
    p["w_eig"], p["b_eig"] = lin(ks[next(it)], ks[next(it)], eig_dim, vertex_dim)
    p["w_kv"], p["b_kv"] = lin(ks[next(it)], ks[next(it)], vertex_dim, query_dim)
    p["w_vv"], p["b_vv"] = lin(ks[next(it)], ks[next(it)], vertex_dim, edge_dim)
    p["w_qe"], p["b_qe"] = lin(ks[next(it)], ks[next(it)], edge_dim, query_dim)
    p["w_ke"], p["b_ke"] = lin(ks[next(it)], ks[next(it)], edge_dim, query_dim)
    p["w_ve"], p["b_ve"] = lin(ks[next(it)], ks[next(it)], edge_dim, vertex_dim)
    p["w_qv"], p["b_qv"] = lin(ks[next(it)], ks[next(it)], vertex_dim, query_dim)
    p["w_l1"], p["b_l1"] = lin(ks[next(it)], ks[next(it)], vertex_dim, query_dim)
    p["w_l2"], p["b_l2"] = lin(ks[next(it)], ks[next(it)], query_dim, vertex_dim)
    p["w_l3"], p["b_l3"] = lin(ks[next(it)], ks[next(it)], vertex_dim, query_dim)
    p["w_l4"], p["b_l4"] = lin(ks[next(it)], ks[next(it)], query_dim, vertex_dim)
    p["w_cls"], p["b_cls"] = lin(ks[next(it)], ks[next(it)], vertex_dim, num_class)
    p["g1"] = jnp.ones((vertex_dim,), jnp.float32)
    p["beta1"] = jnp.zeros((vertex_dim,), jnp.float32)
    p["g2"] = jnp.ones((vertex_dim,), jnp.float32)
    p["beta2"] = jnp.zeros((vertex_dim,), jnp.float32)
    p["cs_table"] = jax.random.normal(ks[next(it)], (n_centrality, LEN), jnp.float32) * 0.1
    p["un_table"] = jax.random.normal(ks[next(it)], (n_uniqueness, LEN), jnp.float32) * 0.1
    return p


if __name__ == "__main__":
    # Small deterministic problem sizes.
    N = 16            # nodes
    E = 8             # hyperedges
    input_dim = 16
    vertex_dim = 32   # == edge_dim == LEN (required by THTN residual adds / layernorms)
    edge_dim = 32
    query_dim = 32
    LEN = 32
    eig_dim = 8
    num_class = 8
    num_heads = 2

    key = jax.random.PRNGKey(0)
    k_in, k_params = jax.random.split(key)
    kis = jax.random.split(k_in, 8)

    v_feat = jax.random.normal(kis[0], (N, input_dim), jnp.float32)
    e_feat = jax.random.normal(kis[1], (E, edge_dim), jnp.float32)
    eign_vec = jax.random.normal(kis[2], (N, eig_dim), jnp.float32)
    # centrality / uniqueness are integer indices into the embedding tables
    cs_idx = jax.random.randint(kis[3], (N,), 0, N)
    un_idx = jax.random.randint(kis[4], (N,), 0, N)
    # TODO(synk): gcn_model(g, node_feat) is an external module; stand in with a
    # deterministic synthetic (N, vertex_dim) feature tensor.
    gcn_out = jax.random.normal(kis[5], (N, vertex_dim), jnp.float32) * 0.1

    # Dense hypergraph incidence (deterministic): node n in edge e iff
    # n % E == e or (n+3) % E == e  -> every edge has members, every node has edges.
    n_ids = jnp.arange(N)[:, None]
    e_ids = jnp.arange(E)[None, :]
    incidence = ((n_ids % E == e_ids) | ((n_ids + 3) % E == e_ids)).astype(jnp.float32)
    mask_in = incidence.T            # (E, N) node -> edge
    mask_con = incidence             # (N, E) edge -> node

    # TODO(synk): reduce_func1/reduce_func2 centrality biases come from NetworkX
    # k-core / clustering / betweenness host-side preprocessing; use deterministic
    # synthetic dense bias matrices here.
    bias_in = jax.random.uniform(kis[6], (E, N), jnp.float32) * incidence.T
    bias_con = jax.random.uniform(kis[7], (N, E), jnp.float32) * incidence

    head_params = [
        make_head_params(k, input_dim, query_dim, vertex_dim, edge_dim, eig_dim,
                         N, N, LEN, num_class)
        for k in jax.random.split(k_params, num_heads)
    ]

    fwd = jax.jit(functools.partial(multi_head_attn_forward,
                                    query_dim=query_dim, merge="cat"))
    out = fwd(head_params, v_feat, e_feat, cs_idx, un_idx, eign_vec, gcn_out,
              mask_in, bias_in, mask_con, bias_con)
    out = jax.block_until_ready(out)

    assert out.shape == (N, num_heads * num_class), out.shape
    assert bool(jnp.all(jnp.isfinite(out)))
    print("KERNEL_OK")
</pallas_src>

<mosaic_0001>
module attributes {stable_mosaic.version = 11 : i64} {
  func.func @_thtn_fused_kernel(%arg0: memref<16x24xbf16, #tpu.memory_space<vmem>>, %arg1: memref<8x32xf32, #tpu.memory_space<vmem>>, %arg2: memref<16x32xf32, #tpu.memory_space<vmem>>, %arg3: memref<8x16xf32, #tpu.memory_space<vmem>>, %arg4: memref<16x8xf32, #tpu.memory_space<vmem>>, %arg5: memref<2x16x32xf32, #tpu.memory_space<vmem>>, %arg6: memref<2x320x128xbf16, #tpu.memory_space<vmem>>, %arg7: memref<2x16x128xf32, #tpu.memory_space<vmem>>, %arg8: memref<16x16xf32, #tpu.memory_space<vmem>>) attributes {dimension_semantics = [], scalar_prefetch = 0 : i64, scratch_operands = 0 : i64, tpu.core_type = #tpu.core_type<tc>} {
    %c0 = arith.constant 0 : index
    %c0_0 = arith.constant 0 : index
    %0 = vector.load %arg0[%c0, %c0_0] : memref<16x24xbf16, #tpu.memory_space<vmem>>, vector<16x24xbf16>
    %c0_1 = arith.constant 0 : index
    %c0_2 = arith.constant 0 : index
    %1 = vector.load %arg1[%c0_1, %c0_2] : memref<8x32xf32, #tpu.memory_space<vmem>>, vector<8x32xf32>
    %c0_3 = arith.constant 0 : index
    %c0_4 = arith.constant 0 : index
    %2 = vector.load %arg2[%c0_3, %c0_4] : memref<16x32xf32, #tpu.memory_space<vmem>>, vector<16x32xf32>
    %c0_5 = arith.constant 0 : index
    %c0_6 = arith.constant 0 : index
    %3 = vector.load %arg3[%c0_5, %c0_6] : memref<8x16xf32, #tpu.memory_space<vmem>>, vector<8x16xf32>
    %c0_7 = arith.constant 0 : index
    %c0_8 = arith.constant 0 : index
    %4 = vector.load %arg4[%c0_7, %c0_8] : memref<16x8xf32, #tpu.memory_space<vmem>>, vector<16x8xf32>
    %c0_9 = arith.constant 0 : index
    %c0_10 = arith.constant 0 : index
    %c0_11 = arith.constant 0 : index
    %5 = vector.load %arg6[%c0_9, %c0_10, %c0_11] : memref<2x320x128xbf16, #tpu.memory_space<vmem>>, vector<1x24x32xbf16>
    %6 = vector.shape_cast %5 : vector<1x24x32xbf16> to vector<24x32xbf16>
    %cst = arith.constant dense<0.000000e+00> : vector<16x32xf32>
    %7 = tpu.matmul %0, %6, %cst {dimension_numbers = #tpu.dot_dimension_numbers<[1], [0], [0], [1], [0, 0, 1, 1], [], []>} : vector<16x24xbf16>, vector<24x32xbf16>, vector<16x32xf32> -> vector<16x32xf32>
    %8 = arith.addf %7, %2 : vector<16x32xf32>
    %c0_12 = arith.constant 0 : index
    %c0_13 = arith.constant 0 : index
    %c0_14 = arith.constant 0 : index
    %9 = vector.load %arg5[%c0_12, %c0_13, %c0_14] : memref<2x16x32xf32, #tpu.memory_space<vmem>>, vector<1x16x32xf32>
    %10 = vector.shape_cast %9 : vector<1x16x32xf32> to vector<16x32xf32>
    %11 = arith.addf %8, %10 : vector<16x32xf32>
    %c0_15 = arith.constant 0 : index
    %c32 = arith.constant 32 : index
    %c0_16 = arith.constant 0 : index
    %12 = vector.load %arg6[%c0_15, %c32, %c0_16] : memref<2x320x128xbf16, #tpu.memory_space<vmem>>, vector<1x32x64xbf16>
    %13 = vector.shape_cast %12 : vector<1x32x64xbf16> to vector<32x64xbf16>
    %14 = arith.truncf %11 : vector<16x32xf32> to vector<16x32xbf16>
    %cst_17 = arith.constant dense<0.000000e+00> : vector<16x64xf32>
    %15 = tpu.matmul %14, %13, %cst_17 {dimension_numbers = #tpu.dot_dimension_numbers<[1], [0], [0], [1], [0, 0, 1, 1], [], []>} : vector<16x32xbf16>, vector<32x64xbf16>, vector<16x64xf32> -> vector<16x64xf32>
    %c0_18 = arith.constant 0 : index
    %c0_19 = arith.constant 0 : index
    %c0_20 = arith.constant 0 : index
    %16 = vector.load %arg7[%c0_18, %c0_19, %c0_20] : memref<2x16x128xf32, #tpu.memory_space<vmem>>, vector<1x1x64xf32>
    %17 = vector.shape_cast %16 : vector<1x1x64xf32> to vector<1x64xf32>
    %18 = vector.broadcast %17 : vector<1x64xf32> to vector<16x64xf32>
    %19 = arith.addf %15, %18 : vector<16x64xf32>
    %c0_21 = arith.constant 0 : index
    %c64 = arith.constant 64 : index
    %c0_22 = arith.constant 0 : index
    %20 = vector.load %arg6[%c0_21, %c64, %c0_22] : memref<2x320x128xbf16, #tpu.memory_space<vmem>>, vector<1x32x32xbf16>
    %21 = vector.shape_cast %20 : vector<1x32x32xbf16> to vector<32x32xbf16>
    %22 = arith.truncf %1 : vector<8x32xf32> to vector<8x32xbf16>
    %cst_23 = arith.constant dense<0.000000e+00> : vector<8x32xf32>
    %23 = tpu.matmul %22, %21, %cst_23 {dimension_numbers = #tpu.dot_dimension_numbers<[1], [0], [0], [1], [0, 0, 1, 1], [], []>} : vector<8x32xbf16>, vector<32x32xbf16>, vector<8x32xf32> -> vector<8x32xf32>
    %c0_24 = arith.constant 0 : index
    %c1 = arith.constant 1 : index
    %c0_25 = arith.constant 0 : index
    %24 = vector.load %arg7[%c0_24, %c1, %c0_25] : memref<2x16x128xf32, #tpu.memory_space<vmem>>, vector<1x1x32xf32>
    %25 = vector.shape_cast %24 : vector<1x1x32xf32> to vector<1x32xf32>
    %26 = vector.broadcast %25 : vector<1x32xf32> to vector<8x32xf32>
    %27 = arith.addf %23, %26 : vector<8x32xf32>
    %28 = vector.extract_strided_slice %19 {offsets = [0, 0], sizes = [16, 32], strides = [1, 1]} : vector<16x64xf32> to vector<16x32xf32>
    %29 = vector.extract_strided_slice %19 {offsets = [0, 32], sizes = [16, 32], strides = [1, 1]} : vector<16x64xf32> to vector<16x32xf32>
    %30 = arith.truncf %27 : vector<8x32xf32> to vector<8x32xbf16>
    %31 = arith.truncf %28 : vector<16x32xf32> to vector<16x32xbf16>
    %cst_26 = arith.constant dense<0.000000e+00> : vector<8x16xf32>
    %32 = tpu.matmul %30, %31, %cst_26 {dimension_numbers = #tpu.dot_dimension_numbers<[1], [1], [0], [0], [0, 0, 1, 0], [], []>} : vector<8x32xbf16>, vector<16x32xbf16>, vector<8x16xf32> -> vector<8x16xf32>
    %cst_27 = arith.constant 0.00999999977 : f32
    %33 = vector.broadcast %cst_27 : f32 to vector<8x16xf32>
    %34 = arith.mulf %33, %32 : vector<8x16xf32>
    %35 = arith.maximumf %32, %34 : vector<8x16xf32>
    %36 = arith.addf %35, %3 : vector<8x16xf32>
    %cst_28 = arith.constant dense<0xFF800000> : vector<8xf32>
    %37 = vector.multi_reduction <maximumf>, %36, %cst_28 [1] : vector<8x16xf32> to vector<8xf32>
    %38 = vector.shape_cast %37 : vector<8xf32> to vector<8x1xf32>
    %39 = vector.broadcast %38 : vector<8x1xf32> to vector<8x16xf32>
    %40 = arith.subf %36, %39 : vector<8x16xf32>
    %41 = math.exp %40 : vector<8x16xf32>
    %cst_29 = arith.constant dense<0.000000e+00> : vector<8xf32>
    %42 = vector.multi_reduction <add>, %41, %cst_29 [1] : vector<8x16xf32> to vector<8xf32>
    %43 = vector.shape_cast %42 : vector<8xf32> to vector<8x1xf32>
    %44 = tpu.reciprocal %43 {approx = true} : vector<8x1xf32> -> vector<8x1xf32>
    %45 = vector.broadcast %44 : vector<8x1xf32> to vector<8x16xf32>
    %46 = arith.mulf %41, %45 : vector<8x16xf32>
    %47 = arith.truncf %46 : vector<8x16xf32> to vector<8x16xbf16>
    %48 = arith.truncf %29 : vector<16x32xf32> to vector<16x32xbf16>
    %cst_30 = arith.constant dense<0.000000e+00> : vector<8x32xf32>
    %49 = tpu.matmul %47, %48, %cst_30 {dimension_numbers = #tpu.dot_dimension_numbers<[1], [0], [0], [1], [0, 0, 1, 1], [], []>} : vector<8x16xbf16>, vector<16x32xbf16>, vector<8x32xf32> -> vector<8x32xf32>
    %cst_31 = arith.constant -5.000000e+29 : f32
    %50 = vector.broadcast %cst_31 : f32 to vector<8x1xf32>
    %51 = arith.cmpf ogt, %38, %50 : vector<8x1xf32>
    %52 = arith.extui %51 : vector<8x1xi1> to vector<8x1xi32>
    %53 = arith.sitofp %52 : vector<8x1xi32> to vector<8x1xf32>
    %54 = vector.broadcast %53 : vector<8x1xf32> to vector<8x32xf32>
    %55 = arith.mulf %49, %54 : vector<8x32xf32>
    %c0_32 = arith.constant 0 : index
    %c4 = arith.constant 4 : index
    %c0_33 = arith.constant 0 : index
    %56 = vector.load %arg7[%c0_32, %c4, %c0_33] : memref<2x16x128xf32, #tpu.memory_space<vmem>>, vector<1x1x32xf32>
    %57 = vector.shape_cast %56 : vector<1x1x32xf32> to vector<1x32xf32>
    %c0_34 = arith.constant 0 : index
    %c5 = arith.constant 5 : index
    %c0_35 = arith.constant 0 : index
    %58 = vector.load %arg7[%c0_34, %c5, %c0_35] : memref<2x16x128xf32, #tpu.memory_space<vmem>>, vector<1x1x32xf32>
    %59 = vector.shape_cast %58 : vector<1x1x32xf32> to vector<1x32xf32>
    %60 = arith.addf %55, %1 : vector<8x32xf32>
    %cst_36 = arith.constant dense<0.000000e+00> : vector<8xf32>
    %61 = vector.multi_reduction <add>, %60, %cst_36 [1] : vector<8x32xf32> to vector<8xf32>
    %62 = vector.shape_cast %61 : vector<8xf32> to vector<8x1xf32>
    %cst_37 = arith.constant 3.200000e+01 : f32
    %63 = vector.broadcast %cst_37 : f32 to vector<8x1xf32>
    %64 = arith.divf %62, %63 : vector<8x1xf32>
    %65 = vector.broadcast %64 : vector<8x1xf32> to vector<8x32xf32>
    %66 = arith.subf %60, %65 : vector<8x32xf32>
    %67 = vector.broadcast %64 : vector<8x1xf32> to vector<8x32xf32>
    %68 = arith.subf %60, %67 : vector<8x32xf32>
    %69 = arith.mulf %66, %68 : vector<8x32xf32>
    %cst_38 = arith.constant dense<0.000000e+00> : vector<8xf32>
    %70 = vector.multi_reduction <add>, %69, %cst_38 [1] : vector<8x32xf32> to vector<8xf32>
    %71 = vector.shape_cast %70 : vector<8xf32> to vector<8x1xf32>
    %cst_39 = arith.constant 3.200000e+01 : f32
    %72 = vector.broadcast %cst_39 : f32 to vector<8x1xf32>
    %73 = arith.divf %71, %72 : vector<8x1xf32>
    %74 = vector.broadcast %64 : vector<8x1xf32> to vector<8x32xf32>
    %75 = arith.subf %60, %74 : vector<8x32xf32>
    %cst_40 = arith.constant 9.99999974E-6 : f32
    %76 = vector.broadcast %cst_40 : f32 to vector<8x1xf32>
    %77 = arith.addf %73, %76 : vector<8x1xf32>
    %78 = math.rsqrt %77 : vector<8x1xf32>
    %79 = vector.broadcast %78 : vector<8x1xf32> to vector<8x32xf32>
    %80 = arith.mulf %75, %79 : vector<8x32xf32>
    %81 = vector.broadcast %57 : vector<1x32xf32> to vector<8x32xf32>
    %82 = arith.mulf %80, %81 : vector<8x32xf32>
    %83 = vector.broadcast %59 : vector<1x32xf32> to vector<8x32xf32>
    %84 = arith.addf %82, %83 : vector<8x32xf32>
    %c0_41 = arith.constant 0 : index
    %c160 = arith.constant 160 : index
    %c0_42 = arith.constant 0 : index
    %85 = vector.load %arg6[%c0_41, %c160, %c0_42] : memref<2x320x128xbf16, #tpu.memory_space<vmem>>, vector<1x32x32xbf16>
    %86 = vector.shape_cast %85 : vector<1x32x32xbf16> to vector<32x32xbf16>
    %87 = arith.truncf %84 : vector<8x32xf32> to vector<8x32xbf16>
    %cst_43 = arith.constant dense<0.000000e+00> : vector<8x32xf32>
    %88 = tpu.matmul %87, %86, %cst_43 {dimension_numbers = #tpu.dot_dimension_numbers<[1], [0], [0], [1], [0, 0, 1, 1], [], []>} : vector<8x32xbf16>, vector<32x32xbf16>, vector<8x32xf32> -> vector<8x32xf32>
    %c0_44 = arith.constant 0 : index
    %c8 = arith.constant 8 : index
    %c0_45 = arith.constant 0 : index
    %89 = vector.load %arg7[%c0_44, %c8, %c0_45] : memref<2x16x128xf32, #tpu.memory_space<vmem>>, vector<1x1x32xf32>
    %90 = vector.shape_cast %89 : vector<1x1x32xf32> to vector<1x32xf32>
    %91 = vector.broadcast %90 : vector<1x32xf32> to vector<8x32xf32>
    %92 = arith.addf %88, %91 : vector<8x32xf32>
    %cst_46 = arith.constant 0.000000e+00 : f32
    %93 = vector.broadcast %cst_46 : f32 to vector<8x32xf32>
    %94 = arith.maximumf %92, %93 : vector<8x32xf32>
    %c0_47 = arith.constant 0 : index
    %c192 = arith.constant 192 : index
    %c0_48 = arith.constant 0 : index
    %95 = vector.load %arg6[%c0_47, %c192, %c0_48] : memref<2x320x128xbf16, #tpu.memory_space<vmem>>, vector<1x32x32xbf16>
    %96 = vector.shape_cast %95 : vector<1x32x32xbf16> to vector<32x32xbf16>
    %97 = arith.truncf %94 : vector<8x32xf32> to vector<8x32xbf16>
    %cst_49 = arith.constant dense<0.000000e+00> : vector<8x32xf32>
    %98 = tpu.matmul %97, %96, %cst_49 {dimension_numbers = #tpu.dot_dimension_numbers<[1], [0], [0], [1], [0, 0, 1, 1], [], []>} : vector<8x32xbf16>, vector<32x32xbf16>, vector<8x32xf32> -> vector<8x32xf32>
    %c0_50 = arith.constant 0 : index
    %c9 = arith.constant 9 : index
    %c0_51 = arith.constant 0 : index
    %99 = vector.load %arg7[%c0_50, %c9, %c0_51] : memref<2x16x128xf32, #tpu.memory_space<vmem>>, vector<1x1x32xf32>
    %100 = vector.shape_cast %99 : vector<1x1x32xf32> to vector<1x32xf32>
    %101 = vector.broadcast %100 : vector<1x32xf32> to vector<8x32xf32>
    %102 = arith.addf %98, %101 : vector<8x32xf32>
    %103 = arith.addf %102, %84 : vector<8x32xf32>
    %cst_52 = arith.constant dense<0.000000e+00> : vector<8xf32>
    %104 = vector.multi_reduction <add>, %103, %cst_52 [1] : vector<8x32xf32> to vector<8xf32>
    %105 = vector.shape_cast %104 : vector<8xf32> to vector<8x1xf32>
    %cst_53 = arith.constant 3.200000e+01 : f32
    %106 = vector.broadcast %cst_53 : f32 to vector<8x1xf32>
    %107 = arith.divf %105, %106 : vector<8x1xf32>
    %108 = vector.broadcast %107 : vector<8x1xf32> to vector<8x32xf32>
    %109 = arith.subf %103, %108 : vector<8x32xf32>
    %110 = vector.broadcast %107 : vector<8x1xf32> to vector<8x32xf32>
    %111 = arith.subf %103, %110 : vector<8x32xf32>
    %112 = arith.mulf %109, %111 : vector<8x32xf32>
    %cst_54 = arith.constant dense<0.000000e+00> : vector<8xf32>
    %113 = vector.multi_reduction <add>, %112, %cst_54 [1] : vector<8x32xf32> to vector<8xf32>
    %114 = vector.shape_cast %113 : vector<8xf32> to vector<8x1xf32>
    %cst_55 = arith.constant 3.200000e+01 : f32
    %115 = vector.broadcast %cst_55 : f32 to vector<8x1xf32>
    %116 = arith.divf %114, %115 : vector<8x1xf32>
    %117 = vector.broadcast %107 : vector<8x1xf32> to vector<8x32xf32>
    %118 = arith.subf %103, %117 : vector<8x32xf32>
    %cst_56 = arith.constant 9.99999974E-6 : f32
    %119 = vector.broadcast %cst_56 : f32 to vector<8x1xf32>
    %120 = arith.addf %116, %119 : vector<8x1xf32>
    %121 = math.rsqrt %120 : vector<8x1xf32>
    %122 = vector.broadcast %121 : vector<8x1xf32> to vector<8x32xf32>
    %123 = arith.mulf %118, %122 : vector<8x32xf32>
    %124 = vector.broadcast %57 : vector<1x32xf32> to vector<8x32xf32>
    %125 = arith.mulf %123, %124 : vector<8x32xf32>
    %126 = vector.broadcast %59 : vector<1x32xf32> to vector<8x32xf32>
    %127 = arith.addf %125, %126 : vector<8x32xf32>
    %c0_57 = arith.constant 0 : index
    %c96 = arith.constant 96 : index
    %c0_58 = arith.constant 0 : index
    %128 = vector.load %arg6[%c0_57, %c96, %c0_58] : memref<2x320x128xbf16, #tpu.memory_space<vmem>>, vector<1x32x64xbf16>
    %129 = vector.shape_cast %128 : vector<1x32x64xbf16> to vector<32x64xbf16>
    %130 = arith.truncf %127 : vector<8x32xf32> to vector<8x32xbf16>
    %cst_59 = arith.constant dense<0.000000e+00> : vector<8x64xf32>
    %131 = tpu.matmul %130, %129, %cst_59 {dimension_numbers = #tpu.dot_dimension_numbers<[1], [0], [0], [1], [0, 0, 1, 1], [], []>} : vector<8x32xbf16>, vector<32x64xbf16>, vector<8x64xf32> -> vector<8x64xf32>
    %c0_60 = arith.constant 0 : index
    %c2 = arith.constant 2 : index
    %c0_61 = arith.constant 0 : index
    %132 = vector.load %arg7[%c0_60, %c2, %c0_61] : memref<2x16x128xf32, #tpu.memory_space<vmem>>, vector<1x1x64xf32>
    %133 = vector.shape_cast %132 : vector<1x1x64xf32> to vector<1x64xf32>
    %134 = vector.broadcast %133 : vector<1x64xf32> to vector<8x64xf32>
    %135 = arith.addf %131, %134 : vector<8x64xf32>
    %c0_62 = arith.constant 0 : index
    %c128 = arith.constant 128 : index
    %c0_63 = arith.constant 0 : index
    %136 = vector.load %arg6[%c0_62, %c128, %c0_63] : memref<2x320x128xbf16, #tpu.memory_space<vmem>>, vector<1x32x32xbf16>
    %137 = vector.shape_cast %136 : vector<1x32x32xbf16> to vector<32x32xbf16>
    %138 = arith.truncf %11 : vector<16x32xf32> to vector<16x32xbf16>
    %cst_64 = arith.constant dense<0.000000e+00> : vector<16x32xf32>
    %139 = tpu.matmul %138, %137, %cst_64 {dimension_numbers = #tpu.dot_dimension_numbers<[1], [0], [0], [1], [0, 0, 1, 1], [], []>} : vector<16x32xbf16>, vector<32x32xbf16>, vector<16x32xf32> -> vector<16x32xf32>
    %c0_65 = arith.constant 0 : index
    %c3 = arith.constant 3 : index
    %c0_66 = arith.constant 0 : index
    %140 = vector.load %arg7[%c0_65, %c3, %c0_66] : memref<2x16x128xf32, #tpu.memory_space<vmem>>, vector<1x1x32xf32>
    %141 = vector.shape_cast %140 : vector<1x1x32xf32> to vector<1x32xf32>
    %142 = vector.broadcast %141 : vector<1x32xf32> to vector<16x32xf32>
    %143 = arith.addf %139, %142 : vector<16x32xf32>
    %144 = vector.extract_strided_slice %135 {offsets = [0, 0], sizes = [8, 32], strides = [1, 1]} : vector<8x64xf32> to vector<8x32xf32>
    %145 = vector.extract_strided_slice %135 {offsets = [0, 32], sizes = [8, 32], strides = [1, 1]} : vector<8x64xf32> to vector<8x32xf32>
    %146 = arith.truncf %143 : vector<16x32xf32> to vector<16x32xbf16>
    %147 = arith.truncf %144 : vector<8x32xf32> to vector<8x32xbf16>
    %cst_67 = arith.constant dense<0.000000e+00> : vector<16x8xf32>
    %148 = tpu.matmul %146, %147, %cst_67 {dimension_numbers = #tpu.dot_dimension_numbers<[1], [1], [0], [0], [0, 0, 1, 0], [], []>} : vector<16x32xbf16>, vector<8x32xbf16>, vector<16x8xf32> -> vector<16x8xf32>
    %cst_68 = arith.constant 0.00999999977 : f32
    %149 = vector.broadcast %cst_68 : f32 to vector<16x8xf32>
    %150 = arith.mulf %149, %148 : vector<16x8xf32>
    %151 = arith.maximumf %148, %150 : vector<16x8xf32>
    %152 = arith.addf %151, %4 : vector<16x8xf32>
    %cst_69 = arith.constant dense<0xFF800000> : vector<16xf32>
    %153 = vector.multi_reduction <maximumf>, %152, %cst_69 [1] : vector<16x8xf32> to vector<16xf32>
    %154 = vector.shape_cast %153 : vector<16xf32> to vector<16x1xf32>
    %155 = vector.broadcast %154 : vector<16x1xf32> to vector<16x8xf32>
    %156 = arith.subf %152, %155 : vector<16x8xf32>
    %157 = math.exp %156 : vector<16x8xf32>
    %cst_70 = arith.constant dense<0.000000e+00> : vector<16xf32>
    %158 = vector.multi_reduction <add>, %157, %cst_70 [1] : vector<16x8xf32> to vector<16xf32>
    %159 = vector.shape_cast %158 : vector<16xf32> to vector<16x1xf32>
    %160 = tpu.reciprocal %159 : vector<16x1xf32> -> vector<16x1xf32>
    %161 = vector.broadcast %160 : vector<16x1xf32> to vector<16x8xf32>
    %162 = arith.mulf %157, %161 : vector<16x8xf32>
    %163 = arith.truncf %162 : vector<16x8xf32> to vector<16x8xbf16>
    %164 = arith.truncf %145 : vector<8x32xf32> to vector<8x32xbf16>
    %cst_71 = arith.constant dense<0.000000e+00> : vector<16x32xf32>
    %165 = tpu.matmul %163, %164, %cst_71 {dimension_numbers = #tpu.dot_dimension_numbers<[1], [0], [0], [1], [0, 0, 1, 1], [], []>} : vector<16x8xbf16>, vector<8x32xbf16>, vector<16x32xf32> -> vector<16x32xf32>
    %cst_72 = arith.constant -5.000000e+29 : f32
    %166 = vector.broadcast %cst_72 : f32 to vector<16x1xf32>
    %167 = arith.cmpf ogt, %154, %166 : vector<16x1xf32>
    %168 = arith.extui %167 : vector<16x1xi1> to vector<16x1xi32>
    %169 = arith.sitofp %168 : vector<16x1xi32> to vector<16x1xf32>
    %170 = vector.broadcast %169 : vector<16x1xf32> to vector<16x32xf32>
    %171 = arith.mulf %165, %170 : vector<16x32xf32>
    %c0_73 = arith.constant 0 : index
    %c6 = arith.constant 6 : index
    %c0_74 = arith.constant 0 : index
    %172 = vector.load %arg7[%c0_73, %c6, %c0_74] : memref<2x16x128xf32, #tpu.memory_space<vmem>>, vector<1x1x32xf32>
    %173 = vector.shape_cast %172 : vector<1x1x32xf32> to vector<1x32xf32>
    %c0_75 = arith.constant 0 : index
    %c7 = arith.constant 7 : index
    %c0_76 = arith.constant 0 : index
    %174 = vector.load %arg7[%c0_75, %c7, %c0_76] : memref<2x16x128xf32, #tpu.memory_space<vmem>>, vector<1x1x32xf32>
    %175 = vector.shape_cast %174 : vector<1x1x32xf32> to vector<1x32xf32>
    %176 = arith.addf %171, %11 : vector<16x32xf32>
    %cst_77 = arith.constant dense<0.000000e+00> : vector<16xf32>
    %177 = vector.multi_reduction <add>, %176, %cst_77 [1] : vector<16x32xf32> to vector<16xf32>
    %178 = vector.shape_cast %177 : vector<16xf32> to vector<16x1xf32>
    %cst_78 = arith.constant 3.200000e+01 : f32
    %179 = vector.broadcast %cst_78 : f32 to vector<16x1xf32>
    %180 = arith.divf %178, %179 : vector<16x1xf32>
    %181 = vector.broadcast %180 : vector<16x1xf32> to vector<16x32xf32>
    %182 = arith.subf %176, %181 : vector<16x32xf32>
    %183 = vector.broadcast %180 : vector<16x1xf32> to vector<16x32xf32>
    %184 = arith.subf %176, %183 : vector<16x32xf32>
    %185 = arith.mulf %182, %184 : vector<16x32xf32>
    %cst_79 = arith.constant dense<0.000000e+00> : vector<16xf32>
    %186 = vector.multi_reduction <add>, %185, %cst_79 [1] : vector<16x32xf32> to vector<16xf32>
    %187 = vector.shape_cast %186 : vector<16xf32> to vector<16x1xf32>
    %cst_80 = arith.constant 3.200000e+01 : f32
    %188 = vector.broadcast %cst_80 : f32 to vector<16x1xf32>
    %189 = arith.divf %187, %188 : vector<16x1xf32>
    %190 = vector.broadcast %180 : vector<16x1xf32> to vector<16x32xf32>
    %191 = arith.subf %176, %190 : vector<16x32xf32>
    %cst_81 = arith.constant 9.99999974E-6 : f32
    %192 = vector.broadcast %cst_81 : f32 to vector<16x1xf32>
    %193 = arith.addf %189, %192 : vector<16x1xf32>
    %194 = math.rsqrt %193 : vector<16x1xf32>
    %195 = vector.broadcast %194 : vector<16x1xf32> to vector<16x32xf32>
    %196 = arith.mulf %191, %195 : vector<16x32xf32>
    %197 = vector.broadcast %173 : vector<1x32xf32> to vector<16x32xf32>
    %198 = arith.mulf %196, %197 : vector<16x32xf32>
    %199 = vector.broadcast %175 : vector<1x32xf32> to vector<16x32xf32>
    %200 = arith.addf %198, %199 : vector<16x32xf32>
    %c0_82 = arith.constant 0 : index
    %c224 = arith.constant 224 : index
    %c0_83 = arith.constant 0 : index
    %201 = vector.load %arg6[%c0_82, %c224, %c0_83] : memref<2x320x128xbf16, #tpu.memory_space<vmem>>, vector<1x32x32xbf16>
    %202 = vector.shape_cast %201 : vector<1x32x32xbf16> to vector<32x32xbf16>
    %203 = arith.truncf %200 : vector<16x32xf32> to vector<16x32xbf16>
    %cst_84 = arith.constant dense<0.000000e+00> : vector<16x32xf32>
    %204 = tpu.matmul %203, %202, %cst_84 {dimension_numbers = #tpu.dot_dimension_numbers<[1], [0], [0], [1], [0, 0, 1, 1], [], []>} : vector<16x32xbf16>, vector<32x32xbf16>, vector<16x32xf32> -> vector<16x32xf32>
    %c0_85 = arith.constant 0 : index
    %c10 = arith.constant 10 : index
    %c0_86 = arith.constant 0 : index
    %205 = vector.load %arg7[%c0_85, %c10, %c0_86] : memref<2x16x128xf32, #tpu.memory_space<vmem>>, vector<1x1x32xf32>
    %206 = vector.shape_cast %205 : vector<1x1x32xf32> to vector<1x32xf32>
    %207 = vector.broadcast %206 : vector<1x32xf32> to vector<16x32xf32>
    %208 = arith.addf %204, %207 : vector<16x32xf32>
    %cst_87 = arith.constant 0.000000e+00 : f32
    %209 = vector.broadcast %cst_87 : f32 to vector<16x32xf32>
    %210 = arith.maximumf %208, %209 : vector<16x32xf32>
    %c0_88 = arith.constant 0 : index
    %c256 = arith.constant 256 : index
    %c0_89 = arith.constant 0 : index
    %211 = vector.load %arg6[%c0_88, %c256, %c0_89] : memref<2x320x128xbf16, #tpu.memory_space<vmem>>, vector<1x32x32xbf16>
    %212 = vector.shape_cast %211 : vector<1x32x32xbf16> to vector<32x32xbf16>
    %213 = arith.truncf %210 : vector<16x32xf32> to vector<16x32xbf16>
    %cst_90 = arith.constant dense<0.000000e+00> : vector<16x32xf32>
    %214 = tpu.matmul %213, %212, %cst_90 {dimension_numbers = #tpu.dot_dimension_numbers<[1], [0], [0], [1], [0, 0, 1, 1], [], []>} : vector<16x32xbf16>, vector<32x32xbf16>, vector<16x32xf32> -> vector<16x32xf32>
    %c0_91 = arith.constant 0 : index
    %c11 = arith.constant 11 : index
    %c0_92 = arith.constant 0 : index
    %215 = vector.load %arg7[%c0_91, %c11, %c0_92] : memref<2x16x128xf32, #tpu.memory_space<vmem>>, vector<1x1x32xf32>
    %216 = vector.shape_cast %215 : vector<1x1x32xf32> to vector<1x32xf32>
    %217 = vector.broadcast %216 : vector<1x32xf32> to vector<16x32xf32>
    %218 = arith.addf %214, %217 : vector<16x32xf32>
    %219 = arith.addf %218, %200 : vector<16x32xf32>
    %cst_93 = arith.constant dense<0.000000e+00> : vector<16xf32>
    %220 = vector.multi_reduction <add>, %219, %cst_93 [1] : vector<16x32xf32> to vector<16xf32>
    %221 = vector.shape_cast %220 : vector<16xf32> to vector<16x1xf32>
    %cst_94 = arith.constant 3.200000e+01 : f32
    %222 = vector.broadcast %cst_94 : f32 to vector<16x1xf32>
    %223 = arith.divf %221, %222 : vector<16x1xf32>
    %224 = vector.broadcast %223 : vector<16x1xf32> to vector<16x32xf32>
    %225 = arith.subf %219, %224 : vector<16x32xf32>
    %226 = vector.broadcast %223 : vector<16x1xf32> to vector<16x32xf32>
    %227 = arith.subf %219, %226 : vector<16x32xf32>
    %228 = arith.mulf %225, %227 : vector<16x32xf32>
    %cst_95 = arith.constant dense<0.000000e+00> : vector<16xf32>
    %229 = vector.multi_reduction <add>, %228, %cst_95 [1] : vector<16x32xf32> to vector<16xf32>
    %230 = vector.shape_cast %229 : vector<16xf32> to vector<16x1xf32>
    %cst_96 = arith.constant 3.200000e+01 : f32
    %231 = vector.broadcast %cst_96 : f32 to vector<16x1xf32>
    %232 = arith.divf %230, %231 : vector<16x1xf32>
    %233 = vector.broadcast %223 : vector<16x1xf32> to vector<16x32xf32>
    %234 = arith.subf %219, %233 : vector<16x32xf32>
    %cst_97 = arith.constant 9.99999974E-6 : f32
    %235 = vector.broadcast %cst_97 : f32 to vector<16x1xf32>
    %236 = arith.addf %232, %235 : vector<16x1xf32>
    %237 = math.rsqrt %236 : vector<16x1xf32>
    %238 = vector.broadcast %237 : vector<16x1xf32> to vector<16x32xf32>
    %239 = arith.mulf %234, %238 : vector<16x32xf32>
    %240 = vector.broadcast %173 : vector<1x32xf32> to vector<16x32xf32>
    %241 = arith.mulf %239, %240 : vector<16x32xf32>
    %242 = vector.broadcast %175 : vector<1x32xf32> to vector<16x32xf32>
    %243 = arith.addf %241, %242 : vector<16x32xf32>
    %c0_98 = arith.constant 0 : index
    %c288 = arith.constant 288 : index
    %c0_99 = arith.constant 0 : index
    %244 = vector.load %arg6[%c0_98, %c288, %c0_99] : memref<2x320x128xbf16, #tpu.memory_space<vmem>>, vector<1x32x8xbf16>
    %245 = vector.shape_cast %244 : vector<1x32x8xbf16> to vector<32x8xbf16>
    %246 = arith.truncf %243 : vector<16x32xf32> to vector<16x32xbf16>
    %cst_100 = arith.constant dense<0.000000e+00> : vector<16x8xf32>
    %247 = tpu.matmul %246, %245, %cst_100 {dimension_numbers = #tpu.dot_dimension_numbers<[1], [0], [0], [1], [0, 0, 1, 1], [], []>} : vector<16x32xbf16>, vector<32x8xbf16>, vector<16x8xf32> -> vector<16x8xf32>
    %c0_101 = arith.constant 0 : index
    %c12 = arith.constant 12 : index
    %c0_102 = arith.constant 0 : index
    %248 = vector.load %arg7[%c0_101, %c12, %c0_102] : memref<2x16x128xf32, #tpu.memory_space<vmem>>, vector<1x1x8xf32>
    %249 = vector.shape_cast %248 : vector<1x1x8xf32> to vector<1x8xf32>
    %250 = vector.broadcast %249 : vector<1x8xf32> to vector<16x8xf32>
    %251 = arith.addf %247, %250 : vector<16x8xf32>
    %c0_103 = arith.constant 0 : index
    %c0_104 = arith.constant 0 : index
    %252 = vector.load %arg8[%c0_103, %c0_104] : memref<16x16xf32, #tpu.memory_space<vmem>>, vector<16x8xf32>
    tpu.vector_store %arg8[%c0_103, %c0_104], %251 {strides = array<i32>} : memref<16x16xf32, #tpu.memory_space<vmem>>, vector<16x8xf32>,
    %c1_105 = arith.constant 1 : index
    %c0_106 = arith.constant 0 : index
    %c0_107 = arith.constant 0 : index
    %253 = vector.load %arg6[%c1_105, %c0_106, %c0_107] : memref<2x320x128xbf16, #tpu.memory_space<vmem>>, vector<1x24x32xbf16>
    %254 = vector.shape_cast %253 : vector<1x24x32xbf16> to vector<24x32xbf16>
    %cst_108 = arith.constant dense<0.000000e+00> : vector<16x32xf32>
    %255 = tpu.matmul %0, %254, %cst_108 {dimension_numbers = #tpu.dot_dimension_numbers<[1], [0], [0], [1], [0, 0, 1, 1], [], []>} : vector<16x24xbf16>, vector<24x32xbf16>, vector<16x32xf32> -> vector<16x32xf32>
    %256 = arith.addf %255, %2 : vector<16x32xf32>
    %c1_109 = arith.constant 1 : index
    %c0_110 = arith.constant 0 : index
    %c0_111 = arith.constant 0 : index
    %257 = vector.load %arg5[%c1_109, %c0_110, %c0_111] : memref<2x16x32xf32, #tpu.memory_space<vmem>>, vector<1x16x32xf32>
    %258 = vector.shape_cast %257 : vector<1x16x32xf32> to vector<16x32xf32>
    %259 = arith.addf %256, %258 : vector<16x32xf32>
    %c1_112 = arith.constant 1 : index
    %c32_113 = arith.constant 32 : index
    %c0_114 = arith.constant 0 : index
    %260 = vector.load %arg6[%c1_112, %c32_113, %c0_114] : memref<2x320x128xbf16, #tpu.memory_space<vmem>>, vector<1x32x64xbf16>
    %261 = vector.shape_cast %260 : vector<1x32x64xbf16> to vector<32x64xbf16>
    %262 = arith.truncf %259 : vector<16x32xf32> to vector<16x32xbf16>
    %cst_115 = arith.constant dense<0.000000e+00> : vector<16x64xf32>
    %263 = tpu.matmul %262, %261, %cst_115 {dimension_numbers = #tpu.dot_dimension_numbers<[1], [0], [0], [1], [0, 0, 1, 1], [], []>} : vector<16x32xbf16>, vector<32x64xbf16>, vector<16x64xf32> -> vector<16x64xf32>
    %c1_116 = arith.constant 1 : index
    %c0_117 = arith.constant 0 : index
    %c0_118 = arith.constant 0 : index
    %264 = vector.load %arg7[%c1_116, %c0_117, %c0_118] : memref<2x16x128xf32, #tpu.memory_space<vmem>>, vector<1x1x64xf32>
    %265 = vector.shape_cast %264 : vector<1x1x64xf32> to vector<1x64xf32>
    %266 = vector.broadcast %265 : vector<1x64xf32> to vector<16x64xf32>
    %267 = arith.addf %263, %266 : vector<16x64xf32>
    %c1_119 = arith.constant 1 : index
    %c64_120 = arith.constant 64 : index
    %c0_121 = arith.constant 0 : index
    %268 = vector.load %arg6[%c1_119, %c64_120, %c0_121] : memref<2x320x128xbf16, #tpu.memory_space<vmem>>, vector<1x32x32xbf16>
    %269 = vector.shape_cast %268 : vector<1x32x32xbf16> to vector<32x32xbf16>
    %270 = arith.truncf %1 : vector<8x32xf32> to vector<8x32xbf16>
    %cst_122 = arith.constant dense<0.000000e+00> : vector<8x32xf32>
    %271 = tpu.matmul %270, %269, %cst_122 {dimension_numbers = #tpu.dot_dimension_numbers<[1], [0], [0], [1], [0, 0, 1, 1], [], []>} : vector<8x32xbf16>, vector<32x32xbf16>, vector<8x32xf32> -> vector<8x32xf32>
    %c1_123 = arith.constant 1 : index
    %c1_124 = arith.constant 1 : index
    %c0_125 = arith.constant 0 : index
    %272 = vector.load %arg7[%c1_123, %c1_124, %c0_125] : memref<2x16x128xf32, #tpu.memory_space<vmem>>, vector<1x1x32xf32>
    %273 = vector.shape_cast %272 : vector<1x1x32xf32> to vector<1x32xf32>
    %274 = vector.broadcast %273 : vector<1x32xf32> to vector<8x32xf32>
    %275 = arith.addf %271, %274 : vector<8x32xf32>
    %276 = vector.extract_strided_slice %267 {offsets = [0, 0], sizes = [16, 32], strides = [1, 1]} : vector<16x64xf32> to vector<16x32xf32>
    %277 = vector.extract_strided_slice %267 {offsets = [0, 32], sizes = [16, 32], strides = [1, 1]} : vector<16x64xf32> to vector<16x32xf32>
    %278 = arith.truncf %275 : vector<8x32xf32> to vector<8x32xbf16>
    %279 = arith.truncf %276 : vector<16x32xf32> to vector<16x32xbf16>
    %cst_126 = arith.constant dense<0.000000e+00> : vector<8x16xf32>
    %280 = tpu.matmul %278, %279, %cst_126 {dimension_numbers = #tpu.dot_dimension_numbers<[1], [1], [0], [0], [0, 0, 1, 0], [], []>} : vector<8x32xbf16>, vector<16x32xbf16>, vector<8x16xf32> -> vector<8x16xf32>
    %cst_127 = arith.constant 0.00999999977 : f32
    %281 = vector.broadcast %cst_127 : f32 to vector<8x16xf32>
    %282 = arith.mulf %281, %280 : vector<8x16xf32>
    %283 = arith.maximumf %280, %282 : vector<8x16xf32>
    %284 = arith.addf %283, %3 : vector<8x16xf32>
    %cst_128 = arith.constant dense<0xFF800000> : vector<8xf32>
    %285 = vector.multi_reduction <maximumf>, %284, %cst_128 [1] : vector<8x16xf32> to vector<8xf32>
    %286 = vector.shape_cast %285 : vector<8xf32> to vector<8x1xf32>
    %287 = vector.broadcast %286 : vector<8x1xf32> to vector<8x16xf32>
    %288 = arith.subf %284, %287 : vector<8x16xf32>
    %289 = math.exp %288 : vector<8x16xf32>
    %cst_129 = arith.constant dense<0.000000e+00> : vector<8xf32>
    %290 = vector.multi_reduction <add>, %289, %cst_129 [1] : vector<8x16xf32> to vector<8xf32>
    %291 = vector.shape_cast %290 : vector<8xf32> to vector<8x1xf32>
    %292 = tpu.reciprocal %291 {approx = true} : vector<8x1xf32> -> vector<8x1xf32>
    %293 = vector.broadcast %292 : vector<8x1xf32> to vector<8x16xf32>
    %294 = arith.mulf %289, %293 : vector<8x16xf32>
    %295 = arith.truncf %294 : vector<8x16xf32> to vector<8x16xbf16>
    %296 = arith.truncf %277 : vector<16x32xf32> to vector<16x32xbf16>
    %cst_130 = arith.constant dense<0.000000e+00> : vector<8x32xf32>
    %297 = tpu.matmul %295, %296, %cst_130 {dimension_numbers = #tpu.dot_dimension_numbers<[1], [0], [0], [1], [0, 0, 1, 1], [], []>} : vector<8x16xbf16>, vector<16x32xbf16>, vector<8x32xf32> -> vector<8x32xf32>
    %cst_131 = arith.constant -5.000000e+29 : f32
    %298 = vector.broadcast %cst_131 : f32 to vector<8x1xf32>
    %299 = arith.cmpf ogt, %286, %298 : vector<8x1xf32>
    %300 = arith.extui %299 : vector<8x1xi1> to vector<8x1xi32>
    %301 = arith.sitofp %300 : vector<8x1xi32> to vector<8x1xf32>
    %302 = vector.broadcast %301 : vector<8x1xf32> to vector<8x32xf32>
    %303 = arith.mulf %297, %302 : vector<8x32xf32>
    %c1_132 = arith.constant 1 : index
    %c4_133 = arith.constant 4 : index
    %c0_134 = arith.constant 0 : index
    %304 = vector.load %arg7[%c1_132, %c4_133, %c0_134] : memref<2x16x128xf32, #tpu.memory_space<vmem>>, vector<1x1x32xf32>
    %305 = vector.shape_cast %304 : vector<1x1x32xf32> to vector<1x32xf32>
    %c1_135 = arith.constant 1 : index
    %c5_136 = arith.constant 5 : index
    %c0_137 = arith.constant 0 : index
    %306 = vector.load %arg7[%c1_135, %c5_136, %c0_137] : memref<2x16x128xf32, #tpu.memory_space<vmem>>, vector<1x1x32xf32>
    %307 = vector.shape_cast %306 : vector<1x1x32xf32> to vector<1x32xf32>
    %308 = arith.addf %303, %1 : vector<8x32xf32>
    %cst_138 = arith.constant dense<0.000000e+00> : vector<8xf32>
    %309 = vector.multi_reduction <add>, %308, %cst_138 [1] : vector<8x32xf32> to vector<8xf32>
    %310 = vector.shape_cast %309 : vector<8xf32> to vector<8x1xf32>
    %cst_139 = arith.constant 3.200000e+01 : f32
    %311 = vector.broadcast %cst_139 : f32 to vector<8x1xf32>
    %312 = arith.divf %310, %311 : vector<8x1xf32>
    %313 = vector.broadcast %312 : vector<8x1xf32> to vector<8x32xf32>
    %314 = arith.subf %308, %313 : vector<8x32xf32>
    %315 = vector.broadcast %312 : vector<8x1xf32> to vector<8x32xf32>
    %316 = arith.subf %308, %315 : vector<8x32xf32>
    %317 = arith.mulf %314, %316 : vector<8x32xf32>
    %cst_140 = arith.constant dense<0.000000e+00> : vector<8xf32>
    %318 = vector.multi_reduction <add>, %317, %cst_140 [1] : vector<8x32xf32> to vector<8xf32>
    %319 = vector.shape_cast %318 : vector<8xf32> to vector<8x1xf32>
    %cst_141 = arith.constant 3.200000e+01 : f32
    %320 = vector.broadcast %cst_141 : f32 to vector<8x1xf32>
    %321 = arith.divf %319, %320 : vector<8x1xf32>
    %322 = vector.broadcast %312 : vector<8x1xf32> to vector<8x32xf32>
    %323 = arith.subf %308, %322 : vector<8x32xf32>
    %cst_142 = arith.constant 9.99999974E-6 : f32
    %324 = vector.broadcast %cst_142 : f32 to vector<8x1xf32>
    %325 = arith.addf %321, %324 : vector<8x1xf32>
    %326 = math.rsqrt %325 : vector<8x1xf32>
    %327 = vector.broadcast %326 : vector<8x1xf32> to vector<8x32xf32>
    %328 = arith.mulf %323, %327 : vector<8x32xf32>
    %329 = vector.broadcast %305 : vector<1x32xf32> to vector<8x32xf32>
    %330 = arith.mulf %328, %329 : vector<8x32xf32>
    %331 = vector.broadcast %307 : vector<1x32xf32> to vector<8x32xf32>
    %332 = arith.addf %330, %331 : vector<8x32xf32>
    %c1_143 = arith.constant 1 : index
    %c160_144 = arith.constant 160 : index
    %c0_145 = arith.constant 0 : index
    %333 = vector.load %arg6[%c1_143, %c160_144, %c0_145] : memref<2x320x128xbf16, #tpu.memory_space<vmem>>, vector<1x32x32xbf16>
    %334 = vector.shape_cast %333 : vector<1x32x32xbf16> to vector<32x32xbf16>
    %335 = arith.truncf %332 : vector<8x32xf32> to vector<8x32xbf16>
    %cst_146 = arith.constant dense<0.000000e+00> : vector<8x32xf32>
    %336 = tpu.matmul %335, %334, %cst_146 {dimension_numbers = #tpu.dot_dimension_numbers<[1], [0], [0], [1], [0, 0, 1, 1], [], []>} : vector<8x32xbf16>, vector<32x32xbf16>, vector<8x32xf32> -> vector<8x32xf32>
    %c1_147 = arith.constant 1 : index
    %c8_148 = arith.constant 8 : index
    %c0_149 = arith.constant 0 : index
    %337 = vector.load %arg7[%c1_147, %c8_148, %c0_149] : memref<2x16x128xf32, #tpu.memory_space<vmem>>, vector<1x1x32xf32>
    %338 = vector.shape_cast %337 : vector<1x1x32xf32> to vector<1x32xf32>
    %339 = vector.broadcast %338 : vector<1x32xf32> to vector<8x32xf32>
    %340 = arith.addf %336, %339 : vector<8x32xf32>
    %cst_150 = arith.constant 0.000000e+00 : f32
    %341 = vector.broadcast %cst_150 : f32 to vector<8x32xf32>
    %342 = arith.maximumf %340, %341 : vector<8x32xf32>
    %c1_151 = arith.constant 1 : index
    %c192_152 = arith.constant 192 : index
    %c0_153 = arith.constant 0 : index
    %343 = vector.load %arg6[%c1_151, %c192_152, %c0_153] : memref<2x320x128xbf16, #tpu.memory_space<vmem>>, vector<1x32x32xbf16>
    %344 = vector.shape_cast %343 : vector<1x32x32xbf16> to vector<32x32xbf16>
    %345 = arith.truncf %342 : vector<8x32xf32> to vector<8x32xbf16>
    %cst_154 = arith.constant dense<0.000000e+00> : vector<8x32xf32>
    %346 = tpu.matmul %345, %344, %cst_154 {dimension_numbers = #tpu.dot_dimension_numbers<[1], [0], [0], [1], [0, 0, 1, 1], [], []>} : vector<8x32xbf16>, vector<32x32xbf16>, vector<8x32xf32> -> vector<8x32xf32>
    %c1_155 = arith.constant 1 : index
    %c9_156 = arith.constant 9 : index
    %c0_157 = arith.constant 0 : index
    %347 = vector.load %arg7[%c1_155, %c9_156, %c0_157] : memref<2x16x128xf32, #tpu.memory_space<vmem>>, vector<1x1x32xf32>
    %348 = vector.shape_cast %347 : vector<1x1x32xf32> to vector<1x32xf32>
    %349 = vector.broadcast %348 : vector<1x32xf32> to vector<8x32xf32>
    %350 = arith.addf %346, %349 : vector<8x32xf32>
    %351 = arith.addf %350, %332 : vector<8x32xf32>
    %cst_158 = arith.constant dense<0.000000e+00> : vector<8xf32>
    %352 = vector.multi_reduction <add>, %351, %cst_158 [1] : vector<8x32xf32> to vector<8xf32>
    %353 = vector.shape_cast %352 : vector<8xf32> to vector<8x1xf32>
    %cst_159 = arith.constant 3.200000e+01 : f32
    %354 = vector.broadcast %cst_159 : f32 to vector<8x1xf32>
    %355 = arith.divf %353, %354 : vector<8x1xf32>
    %356 = vector.broadcast %355 : vector<8x1xf32> to vector<8x32xf32>
    %357 = arith.subf %351, %356 : vector<8x32xf32>
    %358 = vector.broadcast %355 : vector<8x1xf32> to vector<8x32xf32>
    %359 = arith.subf %351, %358 : vector<8x32xf32>
    %360 = arith.mulf %357, %359 : vector<8x32xf32>
    %cst_160 = arith.constant dense<0.000000e+00> : vector<8xf32>
    %361 = vector.multi_reduction <add>, %360, %cst_160 [1] : vector<8x32xf32> to vector<8xf32>
    %362 = vector.shape_cast %361 : vector<8xf32> to vector<8x1xf32>
    %cst_161 = arith.constant 3.200000e+01 : f32
    %363 = vector.broadcast %cst_161 : f32 to vector<8x1xf32>
    %364 = arith.divf %362, %363 : vector<8x1xf32>
    %365 = vector.broadcast %355 : vector<8x1xf32> to vector<8x32xf32>
    %366 = arith.subf %351, %365 : vector<8x32xf32>
    %cst_162 = arith.constant 9.99999974E-6 : f32
    %367 = vector.broadcast %cst_162 : f32 to vector<8x1xf32>
    %368 = arith.addf %364, %367 : vector<8x1xf32>
    %369 = math.rsqrt %368 : vector<8x1xf32>
    %370 = vector.broadcast %369 : vector<8x1xf32> to vector<8x32xf32>
    %371 = arith.mulf %366, %370 : vector<8x32xf32>
    %372 = vector.broadcast %305 : vector<1x32xf32> to vector<8x32xf32>
    %373 = arith.mulf %371, %372 : vector<8x32xf32>
    %374 = vector.broadcast %307 : vector<1x32xf32> to vector<8x32xf32>
    %375 = arith.addf %373, %374 : vector<8x32xf32>
    %c1_163 = arith.constant 1 : index
    %c96_164 = arith.constant 96 : index
    %c0_165 = arith.constant 0 : index
    %376 = vector.load %arg6[%c1_163, %c96_164, %c0_165] : memref<2x320x128xbf16, #tpu.memory_space<vmem>>, vector<1x32x64xbf16>
    %377 = vector.shape_cast %376 : vector<1x32x64xbf16> to vector<32x64xbf16>
    %378 = arith.truncf %375 : vector<8x32xf32> to vector<8x32xbf16>
    %cst_166 = arith.constant dense<0.000000e+00> : vector<8x64xf32>
    %379 = tpu.matmul %378, %377, %cst_166 {dimension_numbers = #tpu.dot_dimension_numbers<[1], [0], [0], [1], [0, 0, 1, 1], [], []>} : vector<8x32xbf16>, vector<32x64xbf16>, vector<8x64xf32> -> vector<8x64xf32>
    %c1_167 = arith.constant 1 : index
    %c2_168 = arith.constant 2 : index
    %c0_169 = arith.constant 0 : index
    %380 = vector.load %arg7[%c1_167, %c2_168, %c0_169] : memref<2x16x128xf32, #tpu.memory_space<vmem>>, vector<1x1x64xf32>
    %381 = vector.shape_cast %380 : vector<1x1x64xf32> to vector<1x64xf32>
    %382 = vector.broadcast %381 : vector<1x64xf32> to vector<8x64xf32>
    %383 = arith.addf %379, %382 : vector<8x64xf32>
    %c1_170 = arith.constant 1 : index
    %c128_171 = arith.constant 128 : index
    %c0_172 = arith.constant 0 : index
    %384 = vector.load %arg6[%c1_170, %c128_171, %c0_172] : memref<2x320x128xbf16, #tpu.memory_space<vmem>>, vector<1x32x32xbf16>
    %385 = vector.shape_cast %384 : vector<1x32x32xbf16> to vector<32x32xbf16>
    %386 = arith.truncf %259 : vector<16x32xf32> to vector<16x32xbf16>
    %cst_173 = arith.constant dense<0.000000e+00> : vector<16x32xf32>
    %387 = tpu.matmul %386, %385, %cst_173 {dimension_numbers = #tpu.dot_dimension_numbers<[1], [0], [0], [1], [0, 0, 1, 1], [], []>} : vector<16x32xbf16>, vector<32x32xbf16>, vector<16x32xf32> -> vector<16x32xf32>
    %c1_174 = arith.constant 1 : index
    %c3_175 = arith.constant 3 : index
    %c0_176 = arith.constant 0 : index
    %388 = vector.load %arg7[%c1_174, %c3_175, %c0_176] : memref<2x16x128xf32, #tpu.memory_space<vmem>>, vector<1x1x32xf32>
    %389 = vector.shape_cast %388 : vector<1x1x32xf32> to vector<1x32xf32>
    %390 = vector.broadcast %389 : vector<1x32xf32> to vector<16x32xf32>
    %391 = arith.addf %387, %390 : vector<16x32xf32>
    %392 = vector.extract_strided_slice %383 {offsets = [0, 0], sizes = [8, 32], strides = [1, 1]} : vector<8x64xf32> to vector<8x32xf32>
    %393 = vector.extract_strided_slice %383 {offsets = [0, 32], sizes = [8, 32], strides = [1, 1]} : vector<8x64xf32> to vector<8x32xf32>
    %394 = arith.truncf %391 : vector<16x32xf32> to vector<16x32xbf16>
    %395 = arith.truncf %392 : vector<8x32xf32> to vector<8x32xbf16>
    %cst_177 = arith.constant dense<0.000000e+00> : vector<16x8xf32>
    %396 = tpu.matmul %394, %395, %cst_177 {dimension_numbers = #tpu.dot_dimension_numbers<[1], [1], [0], [0], [0, 0, 1, 0], [], []>} : vector<16x32xbf16>, vector<8x32xbf16>, vector<16x8xf32> -> vector<16x8xf32>
    %cst_178 = arith.constant 0.00999999977 : f32
    %397 = vector.broadcast %cst_178 : f32 to vector<16x8xf32>
    %398 = arith.mulf %397, %396 : vector<16x8xf32>
    %399 = arith.maximumf %396, %398 : vector<16x8xf32>
    %400 = arith.addf %399, %4 : vector<16x8xf32>
    %cst_179 = arith.constant dense<0xFF800000> : vector<16xf32>
    %401 = vector.multi_reduction <maximumf>, %400, %cst_179 [1] : vector<16x8xf32> to vector<16xf32>
    %402 = vector.shape_cast %401 : vector<16xf32> to vector<16x1xf32>
    %403 = vector.broadcast %402 : vector<16x1xf32> to vector<16x8xf32>
    %404 = arith.subf %400, %403 : vector<16x8xf32>
    %405 = math.exp %404 : vector<16x8xf32>
    %cst_180 = arith.constant dense<0.000000e+00> : vector<16xf32>
    %406 = vector.multi_reduction <add>, %405, %cst_180 [1] : vector<16x8xf32> to vector<16xf32>
    %407 = vector.shape_cast %406 : vector<16xf32> to vector<16x1xf32>
    %408 = tpu.reciprocal %407 : vector<16x1xf32> -> vector<16x1xf32>
    %409 = vector.broadcast %408 : vector<16x1xf32> to vector<16x8xf32>
    %410 = arith.mulf %405, %409 : vector<16x8xf32>
    %411 = arith.truncf %410 : vector<16x8xf32> to vector<16x8xbf16>
    %412 = arith.truncf %393 : vector<8x32xf32> to vector<8x32xbf16>
    %cst_181 = arith.constant dense<0.000000e+00> : vector<16x32xf32>
    %413 = tpu.matmul %411, %412, %cst_181 {dimension_numbers = #tpu.dot_dimension_numbers<[1], [0], [0], [1], [0, 0, 1, 1], [], []>} : vector<16x8xbf16>, vector<8x32xbf16>, vector<16x32xf32> -> vector<16x32xf32>
    %cst_182 = arith.constant -5.000000e+29 : f32
    %414 = vector.broadcast %cst_182 : f32 to vector<16x1xf32>
    %415 = arith.cmpf ogt, %402, %414 : vector<16x1xf32>
    %416 = arith.extui %415 : vector<16x1xi1> to vector<16x1xi32>
    %417 = arith.sitofp %416 : vector<16x1xi32> to vector<16x1xf32>
    %418 = vector.broadcast %417 : vector<16x1xf32> to vector<16x32xf32>
    %419 = arith.mulf %413, %418 : vector<16x32xf32>
    %c1_183 = arith.constant 1 : index
    %c6_184 = arith.constant 6 : index
    %c0_185 = arith.constant 0 : index
    %420 = vector.load %arg7[%c1_183, %c6_184, %c0_185] : memref<2x16x128xf32, #tpu.memory_space<vmem>>, vector<1x1x32xf32>
    %421 = vector.shape_cast %420 : vector<1x1x32xf32> to vector<1x32xf32>
    %c1_186 = arith.constant 1 : index
    %c7_187 = arith.constant 7 : index
    %c0_188 = arith.constant 0 : index
    %422 = vector.load %arg7[%c1_186, %c7_187, %c0_188] : memref<2x16x128xf32, #tpu.memory_space<vmem>>, vector<1x1x32xf32>
    %423 = vector.shape_cast %422 : vector<1x1x32xf32> to vector<1x32xf32>
    %424 = arith.addf %419, %259 : vector<16x32xf32>
    %cst_189 = arith.constant dense<0.000000e+00> : vector<16xf32>
    %425 = vector.multi_reduction <add>, %424, %cst_189 [1] : vector<16x32xf32> to vector<16xf32>
    %426 = vector.shape_cast %425 : vector<16xf32> to vector<16x1xf32>
    %cst_190 = arith.constant 3.200000e+01 : f32
    %427 = vector.broadcast %cst_190 : f32 to vector<16x1xf32>
    %428 = arith.divf %426, %427 : vector<16x1xf32>
    %429 = vector.broadcast %428 : vector<16x1xf32> to vector<16x32xf32>
    %430 = arith.subf %424, %429 : vector<16x32xf32>
    %431 = vector.broadcast %428 : vector<16x1xf32> to vector<16x32xf32>
    %432 = arith.subf %424, %431 : vector<16x32xf32>
    %433 = arith.mulf %430, %432 : vector<16x32xf32>
    %cst_191 = arith.constant dense<0.000000e+00> : vector<16xf32>
    %434 = vector.multi_reduction <add>, %433, %cst_191 [1] : vector<16x32xf32> to vector<16xf32>
    %435 = vector.shape_cast %434 : vector<16xf32> to vector<16x1xf32>
    %cst_192 = arith.constant 3.200000e+01 : f32
    %436 = vector.broadcast %cst_192 : f32 to vector<16x1xf32>
    %437 = arith.divf %435, %436 : vector<16x1xf32>
    %438 = vector.broadcast %428 : vector<16x1xf32> to vector<16x32xf32>
    %439 = arith.subf %424, %438 : vector<16x32xf32>
    %cst_193 = arith.constant 9.99999974E-6 : f32
    %440 = vector.broadcast %cst_193 : f32 to vector<16x1xf32>
    %441 = arith.addf %437, %440 : vector<16x1xf32>
    %442 = math.rsqrt %441 : vector<16x1xf32>
    %443 = vector.broadcast %442 : vector<16x1xf32> to vector<16x32xf32>
    %444 = arith.mulf %439, %443 : vector<16x32xf32>
    %445 = vector.broadcast %421 : vector<1x32xf32> to vector<16x32xf32>
    %446 = arith.mulf %444, %445 : vector<16x32xf32>
    %447 = vector.broadcast %423 : vector<1x32xf32> to vector<16x32xf32>
    %448 = arith.addf %446, %447 : vector<16x32xf32>
    %c1_194 = arith.constant 1 : index
    %c224_195 = arith.constant 224 : index
    %c0_196 = arith.constant 0 : index
    %449 = vector.load %arg6[%c1_194, %c224_195, %c0_196] : memref<2x320x128xbf16, #tpu.memory_space<vmem>>, vector<1x32x32xbf16>
    %450 = vector.shape_cast %449 : vector<1x32x32xbf16> to vector<32x32xbf16>
    %451 = arith.truncf %448 : vector<16x32xf32> to vector<16x32xbf16>
    %cst_197 = arith.constant dense<0.000000e+00> : vector<16x32xf32>
    %452 = tpu.matmul %451, %450, %cst_197 {dimension_numbers = #tpu.dot_dimension_numbers<[1], [0], [0], [1], [0, 0, 1, 1], [], []>} : vector<16x32xbf16>, vector<32x32xbf16>, vector<16x32xf32> -> vector<16x32xf32>
    %c1_198 = arith.constant 1 : index
    %c10_199 = arith.constant 10 : index
    %c0_200 = arith.constant 0 : index
    %453 = vector.load %arg7[%c1_198, %c10_199, %c0_200] : memref<2x16x128xf32, #tpu.memory_space<vmem>>, vector<1x1x32xf32>
    %454 = vector.shape_cast %453 : vector<1x1x32xf32> to vector<1x32xf32>
    %455 = vector.broadcast %454 : vector<1x32xf32> to vector<16x32xf32>
    %456 = arith.addf %452, %455 : vector<16x32xf32>
    %cst_201 = arith.constant 0.000000e+00 : f32
    %457 = vector.broadcast %cst_201 : f32 to vector<16x32xf32>
    %458 = arith.maximumf %456, %457 : vector<16x32xf32>
    %c1_202 = arith.constant 1 : index
    %c256_203 = arith.constant 256 : index
    %c0_204 = arith.constant 0 : index
    %459 = vector.load %arg6[%c1_202, %c256_203, %c0_204] : memref<2x320x128xbf16, #tpu.memory_space<vmem>>, vector<1x32x32xbf16>
    %460 = vector.shape_cast %459 : vector<1x32x32xbf16> to vector<32x32xbf16>
    %461 = arith.truncf %458 : vector<16x32xf32> to vector<16x32xbf16>
    %cst_205 = arith.constant dense<0.000000e+00> : vector<16x32xf32>
    %462 = tpu.matmul %461, %460, %cst_205 {dimension_numbers = #tpu.dot_dimension_numbers<[1], [0], [0], [1], [0, 0, 1, 1], [], []>} : vector<16x32xbf16>, vector<32x32xbf16>, vector<16x32xf32> -> vector<16x32xf32>
    %c1_206 = arith.constant 1 : index
    %c11_207 = arith.constant 11 : index
    %c0_208 = arith.constant 0 : index
    %463 = vector.load %arg7[%c1_206, %c11_207, %c0_208] : memref<2x16x128xf32, #tpu.memory_space<vmem>>, vector<1x1x32xf32>
    %464 = vector.shape_cast %463 : vector<1x1x32xf32> to vector<1x32xf32>
    %465 = vector.broadcast %464 : vector<1x32xf32> to vector<16x32xf32>
    %466 = arith.addf %462, %465 : vector<16x32xf32>
    %467 = arith.addf %466, %448 : vector<16x32xf32>
    %cst_209 = arith.constant dense<0.000000e+00> : vector<16xf32>
    %468 = vector.multi_reduction <add>, %467, %cst_209 [1] : vector<16x32xf32> to vector<16xf32>
    %469 = vector.shape_cast %468 : vector<16xf32> to vector<16x1xf32>
    %cst_210 = arith.constant 3.200000e+01 : f32
    %470 = vector.broadcast %cst_210 : f32 to vector<16x1xf32>
    %471 = arith.divf %469, %470 : vector<16x1xf32>
    %472 = vector.broadcast %471 : vector<16x1xf32> to vector<16x32xf32>
    %473 = arith.subf %467, %472 : vector<16x32xf32>
    %474 = vector.broadcast %471 : vector<16x1xf32> to vector<16x32xf32>
    %475 = arith.subf %467, %474 : vector<16x32xf32>
    %476 = arith.mulf %473, %475 : vector<16x32xf32>
    %cst_211 = arith.constant dense<0.000000e+00> : vector<16xf32>
    %477 = vector.multi_reduction <add>, %476, %cst_211 [1] : vector<16x32xf32> to vector<16xf32>
    %478 = vector.shape_cast %477 : vector<16xf32> to vector<16x1xf32>
    %cst_212 = arith.constant 3.200000e+01 : f32
    %479 = vector.broadcast %cst_212 : f32 to vector<16x1xf32>
    %480 = arith.divf %478, %479 : vector<16x1xf32>
    %481 = vector.broadcast %471 : vector<16x1xf32> to vector<16x32xf32>
    %482 = arith.subf %467, %481 : vector<16x32xf32>
    %cst_213 = arith.constant 9.99999974E-6 : f32
    %483 = vector.broadcast %cst_213 : f32 to vector<16x1xf32>
    %484 = arith.addf %480, %483 : vector<16x1xf32>
    %485 = math.rsqrt %484 : vector<16x1xf32>
    %486 = vector.broadcast %485 : vector<16x1xf32> to vector<16x32xf32>
    %487 = arith.mulf %482, %486 : vector<16x32xf32>
    %488 = vector.broadcast %421 : vector<1x32xf32> to vector<16x32xf32>
    %489 = arith.mulf %487, %488 : vector<16x32xf32>
    %490 = vector.broadcast %423 : vector<1x32xf32> to vector<16x32xf32>
    %491 = arith.addf %489, %490 : vector<16x32xf32>
    %c1_214 = arith.constant 1 : index
    %c288_215 = arith.constant 288 : index
    %c0_216 = arith.constant 0 : index
    %492 = vector.load %arg6[%c1_214, %c288_215, %c0_216] : memref<2x320x128xbf16, #tpu.memory_space<vmem>>, vector<1x32x8xbf16>
    %493 = vector.shape_cast %492 : vector<1x32x8xbf16> to vector<32x8xbf16>
    %494 = arith.truncf %491 : vector<16x32xf32> to vector<16x32xbf16>
    %cst_217 = arith.constant dense<0.000000e+00> : vector<16x8xf32>
    %495 = tpu.matmul %494, %493, %cst_217 {dimension_numbers = #tpu.dot_dimension_numbers<[1], [0], [0], [1], [0, 0, 1, 1], [], []>} : vector<16x32xbf16>, vector<32x8xbf16>, vector<16x8xf32> -> vector<16x8xf32>
    %c1_218 = arith.constant 1 : index
    %c12_219 = arith.constant 12 : index
    %c0_220 = arith.constant 0 : index
    %496 = vector.load %arg7[%c1_218, %c12_219, %c0_220] : memref<2x16x128xf32, #tpu.memory_space<vmem>>, vector<1x1x8xf32>
    %497 = vector.shape_cast %496 : vector<1x1x8xf32> to vector<1x8xf32>
    %498 = vector.broadcast %497 : vector<1x8xf32> to vector<16x8xf32>
    %499 = arith.addf %495, %498 : vector<16x8xf32>
    %c0_221 = arith.constant 0 : index
    %c8_222 = arith.constant 8 : index
    %500 = vector.load %arg8[%c0_221, %c8_222] : memref<16x16xf32, #tpu.memory_space<vmem>>, vector<16x8xf32>
    tpu.vector_store %arg8[%c0_221, %c8_222], %499 {strides = array<i32>} : memref<16x16xf32, #tpu.memory_space<vmem>>, vector<16x8xf32>,
    return
  }
}

</mosaic_0001>

<bundles_post_ra>
// kernel: multi_head_attn_forward.1
= control target key start
LH: loop header
LB: loop body
LE: loop exit
PB: predicated region body
PF: predicated region fallthrough
CT: control target
= control target key end

     0   :  { %vm60_vm0 = vcmask 1043456   ;;  %vm56_vm1 = vcmask 195584   ;;  %s2309_s0 = inlined_call_operand.vmem [shape: bf16[16,24], index: 0, kind: input, shape index: {}]   ;;  %s2310_s1 = inlined_call_operand.vmem [shape: f32[8,32], index: 1, kind: input, shape index: {}]   ;;  %s2311_s2 = inlined_call_operand.vmem [shape: f32[16,32], index: 2, kind: input, shape index: {}]   ;;  %s2312_s3 = inlined_call_operand.vmem [shape: f32[8,16], index: 3, kind: input, shape index: {}]   ;;  %s2313_s4 = inlined_call_operand.vmem [shape: f32[16,8], index: 4, kind: input, shape index: {}]   ;;  %s2314_s5 = inlined_call_operand.vmem [shape: f32[2,16,32], index: 5, kind: input, shape index: {}]   ;;  %s2315_s6 = inlined_call_operand.vmem [shape: bf16[2,320,128], index: 6, kind: input, shape index: {}]   ;;  %s2316_s7 = inlined_call_operand.vmem [shape: f32[2,16,128], index: 7, kind: input, shape index: {}]   ;;  %s2317_s8 = inlined_call_operand.hbm [shape: f32[16,16], index: 8, kind: output, shape index: {}]  }
   0x1   :  { %v41_v0 = vld [vmem:[%s2315_s6 + $0x8] sm:$0xf]  ;;  %v1690_v4 = vld [vmem:[%s2315_s6] sm:$0xff] }
   0x2   :  { %v52_v1 = vunpack.c.l.b16 %v41_v0  ;;  %v1897_v5 = vld [vmem:[%s2309_s0] sm:$0xff] }
   0x4   :  { %v54_v2 = vpack.c.b16 %v52_v1, %v52_v1 }
   0x6   :  { %v62_v3 = vsel %vm60_vm0, %v54_v2, 0 }
   0x7   :  { %70 = vmatpush.bf16.msra.mxu0 %v62_v3 }
   0xb   :  { %71 = vmatpush.bf16.msra.mxu0 %v1690_v4 }
   0xc   :  { %13 = vsyncpa [#allocation3], 0  ;;  %v1692_v6 = vld [vmem:[%s2315_s6 + $0x18] sm:$0xff]  ;;  %v1694_v7 = vld [vmem:[%s2315_s6 + $0x28] sm:$0xff]  ;;  %vm101_vm2 = vcmask 261120   ;;  %s1836_s30 = smov 96  }
   0xd   :  { %111 = vmatpush.bf16.msra.mxu1 %v1692_v6  ;;  %147 = vmatpush.bf16.msra.mxu2 %v1694_v7  ;;  %v1691_v8 = vld [vmem:[%s2315_s6 + $0x10] sm:$0xff]  ;;  %v1693_v9 = vld [vmem:[%s2315_s6 + $0x20] sm:$0xff]  ;;  %v1932_v14 = vld [vmem:[%s2311_s2 + $0x8] sm:$0xff]  ;;  %vm178_vm3 = vcmask 130048   ;;  %v1837_v55 = vmov 0.0   ;;  %v1838_v61 = vmov 32.0  }
   0xe   :  { %1453 = vmatmul.msk.bf16.vlgmr.msra.gmra.mxu0 %vm56_vm1, %v1897_v5  ;;  %v1916_v10 = vld [vmem:[%s2310_s1] sm:$0xff]  ;;  %v79_v18 = vld [vmem:[%s2314_s5 + $0x8] sm:$0xff]  ;;  %vm442_vm12 = vcmask 64512   ;;  %s1839_s1 = smov 8   ;;  %s1840_s24 = smov [#allocation2]  }
   0xf   :  { %v1920_v11 = vpack.c.bf16 %v1916_v10, %v1916_v10  ;;  %v1927_v13 = vld [vmem:[%s2311_s2] sm:$0xff]  ;;  %v1702_v48 = vld [vmem:[%s2315_s6 + $0x48] sm:$0xff]  ;;  %s1431_s25 = sshll.u32 %s1840_s24, 4  ;;  %s1433_s27 = sshll.u32 %s2317_s8, 4  ;;  %s1432_s25 = int_to_ptr.vmem [resolvable:$true] %s1431_s25  ;;  %s1434_s27 = int_to_ptr.hbm [resolvable:$true] %s1433_s27 }
  0x10   :  { %v78_v16 = vld [vmem:[%s2314_s5] sm:$0xff] }
  0x11   :  { %112 = vmatpush.bf16.msra.mxu1 %v1691_v8  ;;  %148 = vmatpush.bf16.msra.mxu2 %v1693_v9  ;;  %v1734_v26 = vld [vmem:[%s2316_s7] ss:$0 sm:$0xff]  ;;  %v1735_v30 = vld [vmem:[%s2316_s7 + $0x1] ss:$0 sm:$0xff] }
  0x12   :  { %v1961_v38 = vld [vmem:[%s2312_s3] sm:$0xff] }
  0x13   :  { %v1701_v49 = vld [vmem:[%s2315_s6 + $0x40] sm:$0xff] }
  0x14   :  { %1471 = vmatmul.msk.bf16.vlgmr.msra.gmra.mxu2 %vm101_vm2, %v1920_v11 }
  0x8b   :  { %v73_v12 = vpop.f32.mrf.mxu0 }
  0x8c   :  { %v74_v15 = vadd.f32 %v73_v12, %v1927_v13  ;;  %v1696_v12 = vld [vmem:[%s2315_s6 + $0x58] sm:$0xff] }
  0x8d   :  { %279 = vmatpush.bf16.msrb.mxu1 %v1696_v12  ;;  %v1741_v12 = vld [vmem:[%s2316_s7 + $0x2] ss:$0 sm:$0xff] }
  0x8e   :  { %v1942_v20 = vadd.f32 %v78_v16, %v74_v15  ;;  %v1695_v15 = vld [vmem:[%s2315_s6 + $0x50] sm:$0xff] }
  0x91   :  { %280 = vmatpush.bf16.msrb.mxu1 %v1695_v15 }
  0x93   :  { %v75_v17 = vpop.f32.mrf.mxu0 }
  0x94   :  { %v76_v19 = vadd.f32 %v75_v17, %v1932_v14 }
  0x96   :  { %v1944_v21 = vadd.f32 %v79_v18, %v76_v19 }
  0x97   :  { %v150_v23 = vpop.f32.mrf.mxu2 }
  0x98   :  { %v86_v22 = vpack.c.bf16 %v1944_v21, %v1942_v20  ;;  %v151_v32 = vadd.f32 %v1735_v30, %v150_v23  ;;  %v1738_v30 = vld [vmem:[%s2316_s7 + $0x5] ss:$0 sm:$0xff] }
  0x9a   :  { %1462 = vmatmul.msk.bf16.vlgmr.msra.gmra.mxu1 %vm101_vm2, %v86_v22  ;;  %v154_v34 = vpack.c.bf16 %v151_v32, %v151_v32 }
  0x9f   :  { %v152_v24 = vpop.f32.mrf.mxu2 }
 0x117   :  { %v114_v25 = vpop.f32.mrf.mxu1 }
 0x118   :  { %v115_v28 = vadd.f32 %v1734_v26, %v114_v25 }
 0x11f   :  { %v116_v27 = vpop.f32.mrf.mxu1 }
 0x120   :  { %v117_v29 = vadd.f32 %v1734_v26, %v116_v27  ;;  %v1737_v27 = vld [vmem:[%s2316_s7 + $0x4] ss:$0 sm:$0xff] }
 0x122   :  { %v155_v31 = vpack.c.bf16 %v117_v29, %v115_v28 }
 0x124   :  { %192 = vrot.lane.b32.xlu1 %v155_v31, %s1836_s30  ;;  %v160_v33 = vsel %vm101_vm2, %v155_v31, 0 }
 0x125   :  { %169 = vmatpush.bf16.xpose.msra.mxu3 %v160_v33 }
 0x12c   :  { %1472 = vmatmul.msk.bf16.vlgmr.msra.gmra.mxu3 %vm101_vm2, %v154_v34  ;;  %v1698_v34 = vld [vmem:[%s2315_s6 + $0x68] sm:$0xff] }
 0x12d   :  { %315 = vmatpush.bf16.msrb.mxu2 %v1698_v34 }
 0x196   :  { %v193_v35 = vpop.permute.xlu1 %192 }
 0x197   :  { %205 = vmatpush.bf16.msrb.mxu0 %v193_v35  ;;  %v1697_v35 = vld [vmem:[%s2315_s6 + $0x60] sm:$0xff] }
 0x198   :  { %316 = vmatpush.bf16.msrb.mxu2 %v1697_v35  ;;  %v2037_v35 = vld [vmem:[%s2313_s4 + $0x8] sm:$0xff] }
 0x19b   :  { %406 = vmatpush.bf16.msra.mxu0 %v1702_v48 }
 0x19f   :  { %407 = vmatpush.bf16.msra.mxu0 %v1701_v49 }
 0x1af   :  { %v171_v36 = vpop.f32.mrf.mxu3 }
 0x1b0   :  { %v175_v37 = vmul.f32 0.01, %v171_v36 }
 0x1b2   :  { %v176_v39 = vmax.f32 %v171_v36, %v175_v37  ;;  %v1739_v36 = vld [vmem:[%s2316_s7 + $0x8] ss:$0 sm:$0xff] }
 0x1b4   :  { %v177_v40 = vadd.f32 %v176_v39, %v1961_v38 }
 0x1b6   :  { %v179_v41 = vsel %vm178_vm3, %v177_v40, -inf }
 0x1b7   :  { %180 = vmax.xlane.f32.xlu0 %v179_v41  ;;  %v173_v42 = vpop.f32.mrf.mxu3 }
 0x22a   :  { %v181_v43 = vpop.xlane.xlu0 %180 }
 0x22b   :  { %v182_v44 = vsub.f32 %v177_v40, %v181_v43  ;;  %vm211_vm4 = vcmp.gt.f32.partialorder %v181_v43, -5e+29  ;;  %v1740_v43 = vld [vmem:[%s2316_s7 + $0x9] ss:$0 sm:$0xff] }
 0x22c   :  { %v1474_v56 = vsel %vm211_vm4, 1.0, %v1837_v55 }
 0x22d   :  { %v183_v45 = vmul.f32 1.442695, %v182_v44 }
 0x22f   :  { %1760 = vpow2.f32 %v183_v45 }
 0x235   :  { %v1761_v46 = vpop.eup %1760 }
 0x236   :  { %v185_v47 = vsel %vm178_vm3, %v1761_v46, 0.0 }
 0x237   :  { %186 = vadd.xlane.f32.xlu0 %v185_v47 }
 0x2aa   :  { %v187_v50 = vpop.xlane.xlu0 %186 }
 0x2ab   :  { %1762 = vrcp.f32 %v187_v50 }
 0x2ac   :  { %1764 = vrcp.f32 %v1838_v61 }
 0x2b1   :  { %v1763_v51 = vpop.eup %1762 }
 0x2b2   :  { %v189_v52 = vmul.f32 %v1763_v51, %v1761_v46  ;;  %v1765_v62 = vpop.eup %1764 }
 0x2b3   :  { %v222_v63 = vmul.f32 32.0, %v1765_v62  ;;  %vm226_vm5 = vweird.f32 %v1765_v62 }
 0x2b4   :  { %v190_v53 = vpack.c.bf16 %v189_v52, %v189_v52 }
 0x2b5   :  { %v223_v0 = vsub.f32 1.0, %v222_v63 }
 0x2b6   :  { %1473 = vmatmul.msk.bf16.vlgmr.msrb.gmra.mxu0 %vm178_vm3, %v190_v53 }
 0x2b7   :  { %v224_v1 = vmul.f32 %v1765_v62, %v223_v0 }
 0x2b9   :  { %v225_v2 = vadd.f32 %v1765_v62, %v224_v1 }
 0x2bb   :  { %v1977_v3 = vsel %vm226_vm5, %v1765_v62, %v225_v2 }
 0x2c6   :  { %1510 = vmatmul.msk.bf16.vlgmr.msra.gmra.mxu0 %vm101_vm2, %v86_v22 }
 0x333   :  { %v207_v54 = vpop.f32.mrf.mxu0 }
 0x334   :  { %v214_v57 = vmul.f32 %v1474_v56, %v207_v54  ;;  %v1700_v54 = vld [vmem:[%s2315_s6 + $0x38] sm:$0xff]  ;;  %v1699_v56 = vld [vmem:[%s2315_s6 + $0x30] sm:$0xff] }
 0x335   :  { %375 = vmatpush.bf16.msrb.mxu3 %v1700_v54 }
 0x336   :  { %v217_v58 = vadd.f32 %v214_v57, %v1916_v10 }
 0x338   :  { %v218_v59 = vsel %vm101_vm2, %v217_v58, 0.0 }
 0x339   :  { %219 = vadd.xlane.f32.xlu1 %v218_v59  ;;  %376 = vmatpush.bf16.msrb.mxu3 %v1699_v56 }
 0x33b   :  { %v209_v60 = vpop.f32.mrf.mxu0 }
 0x3ac   :  { %v220_v4 = vpop.xlane.xlu1 %219 }
 0x3ad   :  { %v228_v6 = vmul.f32 %v1977_v3, %v220_v4 }
 0x3af   :  { %v229_v7 = vsub.f32 %v217_v58, %v228_v6 }
 0x3b1   :  { %v230_v8 = vmul.f32 %v229_v7, %v229_v7 }
 0x3b3   :  { %v231_v9 = vsel %vm101_vm2, %v230_v8, 0.0 }
 0x3b4   :  { %232 = vadd.xlane.f32.xlu2 %v231_v9  ;;  %v409_v9 = vpop.f32.mrf.mxu0 }
 0x427   :  { %v233_v16 = vpop.xlane.xlu2 %232 }
 0x428   :  { %v234_v17 = vmul.f32 %v233_v16, %v1977_v3 }
 0x42a   :  { %v235_v18 = vadd.f32 1e-05, %v234_v17 }
 0x42c   :  { %1766 = vrsqrt.f32 %v235_v18  ;;  %vm242_vm7 = vweird.f32 %v235_v18 }
 0x432   :  { %v1767_v19 = vpop.eup %1766 }
 0x433   :  { %v237_v22 = vmul.f32 %v1767_v19, %v235_v18  ;;  %vm243_vm6 = vweird.f32 %v1767_v19  ;;  %v411_v18 = vpop.f32.mrf.mxu0 }
 0x434   :  { %vm244_vm8 = vmor %vm242_vm7, %vm243_vm6 }
 0x435   :  { %v238_v23 = vmul.f32 %v1767_v19, %v237_v22 }
 0x437   :  { %v239_v24 = vmul.f32 0.5, %v238_v23 }
 0x439   :  { %v240_v25 = vsub.f32 1.5, %v239_v24 }
 0x43b   :  { %v241_v26 = vmul.f32 %v1767_v19, %v240_v25 }
 0x43d   :  { %v245_v28 = vsel %vm244_vm8, %v1767_v19, %v241_v26  ;;  %v1736_v19 = vld [vmem:[%s2316_s7 + $0x3] ss:$0 sm:$0xff] }
 0x43e   :  { %v246_v29 = vmul.f32 %v245_v28, %v229_v7  ;;  %v412_v23 = vadd.f32 %v1736_v19, %v411_v18  ;;  %v410_v25 = vadd.f32 %v1736_v19, %v409_v9 }
 0x440   :  { %v248_v31 = vmul.f32 %v1737_v27, %v246_v29  ;;  %v414_v26 = vpack.c.bf16 %v412_v23, %v410_v25  ;;  %v2030_v29 = vld [vmem:[%s2313_s4] sm:$0xff] }
 0x442   :  { %v250_v32 = vadd.f32 %v1738_v30, %v248_v31 }
 0x444   :  { %v255_v33 = vpack.c.bf16 %v250_v32, %v250_v32 }
 0x446   :  { %1483 = vmatmul.msk.bf16.vlgmr.msrb.gmra.mxu1 %vm101_vm2, %v255_v33 }
 0x4c3   :  { %v282_v37 = vpop.f32.mrf.mxu1 }
 0x4c4   :  { %v283_v39 = vadd.f32 %v1739_v36, %v282_v37 }
 0x4c6   :  { %v286_v40 = vmax.f32 %v283_v39, 0.0 }
 0x4c8   :  { %v291_v41 = vpack.c.bf16 %v286_v40, %v286_v40 }
 0x4ca   :  { %1492 = vmatmul.msk.bf16.vlgmr.msrb.gmra.mxu2 %vm101_vm2, %v291_v41 }
 0x4cb   :  { %v284_v42 = vpop.f32.mrf.mxu1 }
 0x54d   :  { %v318_v44 = vpop.f32.mrf.mxu2 }
 0x54e   :  { %v319_v45 = vadd.f32 %v1740_v43, %v318_v44 }
 0x550   :  { %v322_v46 = vadd.f32 %v319_v45, %v250_v32 }
 0x552   :  { %v323_v47 = vsel %vm101_vm2, %v322_v46, 0.0 }
 0x553   :  { %324 = vadd.xlane.f32.xlu2 %v323_v47 }
 0x555   :  { %v320_v48 = vpop.f32.mrf.mxu2 }
 0x5c6   :  { %v325_v49 = vpop.xlane.xlu2 %324 }
 0x5c7   :  { %v326_v50 = vmul.f32 %v325_v49, %v1977_v3 }
 0x5c9   :  { %v327_v51 = vsub.f32 %v322_v46, %v326_v50 }
 0x5cb   :  { %v328_v52 = vmul.f32 %v327_v51, %v327_v51 }
 0x5cd   :  { %v329_v53 = vsel %vm101_vm2, %v328_v52, 0.0 }
 0x5ce   :  { %330 = vadd.xlane.f32.xlu0 %v329_v53 }
 0x641   :  { %v331_v57 = vpop.xlane.xlu0 %330 }
 0x642   :  { %v332_v58 = vmul.f32 %v331_v57, %v1977_v3 }
 0x644   :  { %v333_v59 = vadd.f32 1e-05, %v332_v58 }
 0x646   :  { %1768 = vrsqrt.f32 %v333_v59  ;;  %vm340_vm10 = vweird.f32 %v333_v59 }
 0x64c   :  { %v1769_v60 = vpop.eup %1768 }
 0x64d   :  { %v335_v61 = vmul.f32 %v1769_v60, %v333_v59  ;;  %vm341_vm9 = vweird.f32 %v1769_v60 }
 0x64e   :  { %vm342_vm11 = vmor %vm340_vm10, %vm341_vm9 }
 0x64f   :  { %v336_v62 = vmul.f32 %v1769_v60, %v335_v61 }
 0x651   :  { %v337_v63 = vmul.f32 0.5, %v336_v62 }
 0x653   :  { %v338_v0 = vsub.f32 1.5, %v337_v63 }
 0x655   :  { %v339_v1 = vmul.f32 %v1769_v60, %v338_v0 }
 0x657   :  { %v343_v2 = vsel %vm342_vm11, %v1769_v60, %v339_v1 }
 0x658   :  { %v344_v4 = vmul.f32 %v343_v2, %v327_v51 }
 0x65a   :  { %v345_v6 = vmul.f32 %v1737_v27, %v344_v4 }
 0x65c   :  { %v346_v7 = vadd.f32 %v1738_v30, %v345_v6 }
 0x65e   :  { %v351_v8 = vpack.c.bf16 %v346_v7, %v346_v7 }
 0x660   :  { %1501 = vmatmul.msk.bf16.vlgmr.msrb.gmra.mxu3 %vm101_vm2, %v351_v8 }
 0x6e3   :  { %v378_v15 = vpop.f32.mrf.mxu3 }
 0x6e4   :  { %v379_v16 = vadd.f32 %v1741_v12, %v378_v15 }
 0x6e6   :  { %v415_v17 = vpack.c.bf16 %v379_v16, %v379_v16 }
 0x6e8   :  { %v420_v22 = vsel %vm101_vm2, %v415_v17, 0 }
 0x6e9   :  { %429 = vmatpush.bf16.xpose.msra.mxu1 %v420_v22 }
 0x6eb   :  { %v380_v24 = vpop.f32.mrf.mxu3 }
 0x6f0   :  { %1511 = vmatmul.msk.bf16.vlgmr.msra.gmra.mxu1 %vm101_vm2, %v414_v26 }
 0x76d   :  { %v431_v27 = vpop.f32.mrf.mxu1 }
 0x76e   :  { %v436_v28 = vmul.f32 0.01, %v431_v27 }
 0x770   :  { %v438_v30 = vmax.f32 %v431_v27, %v436_v28 }
 0x772   :  { %v440_v31 = vadd.f32 %v438_v30, %v2030_v29 }
 0x774   :  { %v443_v32 = vsel %vm442_vm12, %v440_v31, -inf }
 0x775   :  { %444 = vmax.xlane.f32.xlu2 %v443_v32  ;;  %v433_v33 = vpop.f32.mrf.mxu1 }
 0x776   :  { %v437_v34 = vmul.f32 0.01, %v433_v33 }
 0x778   :  { %v439_v36 = vmax.f32 %v433_v33, %v437_v34 }
 0x77a   :  { %v441_v37 = vadd.f32 %v439_v36, %v2037_v35 }
 0x77c   :  { %v446_v39 = vsel %vm442_vm12, %v441_v37, -inf }
 0x77d   :  { %447 = vmax.xlane.f32.xlu0 %v446_v39 }
 0x7e8   :  { %v445_v40 = vpop.xlane.xlu2 %444 }
 0x7e9   :  { %v449_v41 = vsub.f32 %v440_v31, %v445_v40  ;;  %vm515_vm9 = vcmp.gt.f32.partialorder %v445_v40, -5e+29 }
 0x7ea   :  { %v1513_v23 = vsel %vm515_vm9, 1.0, %v1837_v55 }
 0x7eb   :  { %v451_v42 = vmul.f32 1.442695, %v449_v41 }
 0x7ed   :  { %1770 = vpow2.f32 %v451_v42 }
 0x7f0   :  { %v448_v43 = vpop.xlane.xlu0 %447 }
 0x7f1   :  { %v450_v44 = vsub.f32 %v441_v37, %v448_v43  ;;  %vm516_vm10 = vcmp.gt.f32.partialorder %v448_v43, -5e+29 }
 0x7f2   :  { %v1514_v28 = vsel %vm516_vm10, 1.0, %v1837_v55 }
 0x7f3   :  { %v1771_v45 = vpop.eup %1770  ;;  %v453_v46 = vmul.f32 1.442695, %v450_v44 }
 0x7f4   :  { %v455_v47 = vsel %vm442_vm12, %v1771_v45, 0.0 }
 0x7f5   :  { %1772 = vpow2.f32 %v453_v46  ;;  %456 = vadd.xlane.f32.xlu2 %v455_v47  ;;  %v1703_v47 = vld [vmem:[%s2315_s6 + $0x70] sm:$0xff] }
 0x7fb   :  { %v1773_v48 = vpop.eup %1772 }
 0x7fc   :  { %v458_v49 = vsel %vm442_vm12, %v1773_v48, 0.0 }
 0x7fd   :  { %459 = vadd.xlane.f32.xlu0 %v458_v49 }
 0x80d   :  { %493 = vrot.lane.b32.xlu2 %v415_v17, %s1836_s30 }
 0x868   :  { %v457_v50 = vpop.xlane.xlu2 %456 }
 0x869   :  { %1774 = vrcp.f32 %v457_v50  ;;  %v472_v62 = vand.u32 2147483648, %v457_v50  ;;  %vm466_vm14 = vweird.f32 %v457_v50  ;;  %v470_v63 = vand.u32 2147483647, %v457_v50 }
 0x86b   :  { %v473_v7 = vor.u32 1.1754944e-38, %v472_v62  ;;  %vm471_vm5 = vcmp.eq.f32.partialorder %v470_v63, 8.507059e+37 }
 0x86f   :  { %v1775_v51 = vpop.eup %1774 }
 0x870   :  { %v462_v52 = vmul.f32 %v1775_v51, %v457_v50  ;;  %v494_v53 = vpop.permute.xlu2 %493  ;;  %v460_v54 = vpop.xlane.xlu0 %459  ;;  %vm467_vm13 = vweird.f32 %v1775_v51 }
 0x871   :  { %v499_v56 = vsel %vm60_vm0, %v494_v53, 0  ;;  %1776 = vrcp.f32 %v460_v54  ;;  %vm468_vm15 = vmor %vm466_vm14, %vm467_vm13  ;;  %v486_v1 = vand.u32 2147483648, %v460_v54  ;;  %v484_v6 = vand.u32 2147483647, %v460_v54 }
 0x872   :  { %v463_v57 = vsub.f32 1.0, %v462_v52  ;;  %508 = vmatpush.bf16.msra.mxu2 %v499_v56  ;;  %vm480_vm6 = vweird.f32 %v460_v54 }
 0x873   :  { %v487_v12 = vor.u32 1.1754944e-38, %v486_v1  ;;  %vm485_vm8 = vcmp.eq.f32.partialorder %v484_v6, 8.507059e+37  ;;  %v2072_v6 = vld [vmem:[%s2316_s7 + $0x7] ss:$0 sm:$0xff] }
 0x874   :  { %v464_v58 = vmul.f32 %v1775_v51, %v463_v57 }
 0x876   :  { %v465_v60 = vadd.f32 %v1775_v51, %v464_v58 }
 0x877   :  { %v1777_v59 = vpop.eup %1776 }
 0x878   :  { %v476_v61 = vmul.f32 %v1777_v59, %v460_v54  ;;  %v469_v2 = vsel %vm468_vm15, %v1775_v51, %v465_v60  ;;  %vm481_vm4 = vweird.f32 %v1777_v59 }
 0x879   :  { %v474_v9 = vsel %vm471_vm5, %v473_v7, %v469_v2  ;;  %vm482_vm7 = vmor %vm480_vm6, %vm481_vm4 }
 0x87a   :  { %v477_v0 = vsub.f32 1.0, %v476_v61  ;;  %v489_v17 = vmul.f32 %v1771_v45, %v474_v9 }
 0x87c   :  { %v478_v4 = vmul.f32 %v1777_v59, %v477_v0  ;;  %v2067_v0 = vld [vmem:[%s2316_s7 + $0x6] ss:$0 sm:$0xff] }
 0x87e   :  { %v479_v8 = vadd.f32 %v1777_v59, %v478_v4 }
 0x880   :  { %v483_v15 = vsel %vm482_vm7, %v1777_v59, %v479_v8 }
 0x881   :  { %v488_v16 = vsel %vm485_vm8, %v487_v12, %v483_v15 }
 0x882   :  { %v490_v18 = vmul.f32 %v1773_v48, %v488_v16 }
 0x884   :  { %v491_v19 = vpack.c.bf16 %v490_v18, %v489_v17  ;;  %v1706_v17 = vld [vmem:[%s2315_s6 + $0x88] sm:$0xff]  ;;  %v1705_v18 = vld [vmem:[%s2315_s6 + $0x80] sm:$0xff] }
 0x885   :  { %643 = vmatpush.bf16.msrb.mxu0 %v1706_v17 }
 0x886   :  { %1512 = vmatmul.msk.bf16.vlgmr.msra.gmra.mxu2 %vm442_vm12, %v491_v19  ;;  %v1544_v19 = vld [vmem:[%s2315_s6 + $0xa8] sm:$0xf] }
 0x889   :  { %644 = vmatpush.bf16.msrb.mxu0 %v1705_v18 }
 0x909   :  { %v510_v22 = vpop.f32.mrf.mxu2 }
 0x90a   :  { %v521_v24 = vmul.f32 %v1513_v23, %v510_v22  ;;  %v748_v22 = vunpack.c.l.b16 %v1544_v19 }
 0x90c   :  { %v525_v25 = vadd.f32 %v521_v24, %v1942_v20  ;;  %v750_v23 = vpack.c.b16 %v748_v22, %v748_v22 }
 0x90e   :  { %v527_v26 = vsel %vm101_vm2, %v525_v25, 0.0  ;;  %v753_v24 = vsel %vm60_vm0, %v750_v23, 0 }
 0x90f   :  { %528 = vadd.xlane.f32.xlu0 %v527_v26  ;;  %761 = vmatpush.bf16.msrb.mxu2 %v753_v24 }
 0x911   :  { %v512_v27 = vpop.f32.mrf.mxu2 }
 0x912   :  { %v522_v30 = vmul.f32 %v1514_v28, %v512_v27  ;;  %v1744_v27 = vld [vmem:[%s2316_s7 + $0xa] ss:$0 sm:$0xff] }
 0x914   :  { %v526_v31 = vadd.f32 %v522_v30, %v1944_v21  ;;  %v1704_v21 = vld [vmem:[%s2315_s6 + $0x78] sm:$0xff] }
 0x915   :  { %605 = vmatpush.bf16.msra.mxu3 %v1704_v21 }
 0x916   :  { %v530_v32 = vsel %vm101_vm2, %v526_v31, 0.0 }
 0x917   :  { %531 = vadd.xlane.f32.xlu0 %v530_v32 }
 0x919   :  { %606 = vmatpush.bf16.msra.mxu3 %v1703_v47 }
 0x982   :  { %v529_v33 = vpop.xlane.xlu0 %528 }
 0x983   :  { %v533_v34 = vmul.f32 %v529_v33, %v1977_v3 }
 0x985   :  { %v535_v36 = vsub.f32 %v525_v25, %v533_v34  ;;  %v1709_v25 = vld [vmem:[%s2315_s6 + $0xa0] sm:$0xff] }
 0x986   :  { %762 = vmatpush.bf16.msrb.mxu2 %v1709_v25 }
 0x987   :  { %v537_v37 = vmul.f32 %v535_v36, %v535_v36 }
 0x989   :  { %v539_v20 = vsel %vm101_vm2, %v537_v37, 0.0  ;;  %1549 = vmatmul.msk.bf16.vlgmr.msrb.gmra.mxu2 %vm56_vm1, %v1897_v5 }
 0x98a   :  { %540 = vadd.xlane.f32.xlu1 %v539_v20  ;;  %v532_v39 = vpop.xlane.xlu0 %531 }
 0x98b   :  { %v534_v40 = vmul.f32 %v532_v39, %v1977_v3 }
 0x98d   :  { %v536_v41 = vsub.f32 %v526_v31, %v534_v40 }
 0x98f   :  { %v538_v42 = vmul.f32 %v536_v41, %v536_v41 }
 0x991   :  { %v542_v43 = vsel %vm101_vm2, %v538_v42, 0.0 }
 0x992   :  { %543 = vadd.xlane.f32.xlu0 %v542_v43 }
 0x9fd   :  { %v541_v44 = vpop.xlane.xlu1 %540 }
 0x9fe   :  { %v545_v45 = vmul.f32 %v541_v44, %v1977_v3 }
 0xa00   :  { %v547_v46 = vadd.f32 1e-05, %v545_v45  ;;  %v1550_v45 = vld [vmem:[%s2314_s5 + $0x10] sm:$0xff] }
 0xa02   :  { %1778 = vrsqrt.f32 %v547_v46  ;;  %vm555_vm13 = vweird.f32 %v547_v46 }
 0xa05   :  { %v544_v48 = vpop.xlane.xlu0 %543 }
 0xa06   :  { %v546_v49 = vmul.f32 %v544_v48, %v1977_v3  ;;  %v1551_v48 = vld [vmem:[%s2314_s5 + $0x18] sm:$0xff] }
 0xa08   :  { %v1779_v50 = vpop.eup %1778  ;;  %v548_v51 = vadd.f32 1e-05, %v546_v49 }
 0xa09   :  { %v550_v52 = vmul.f32 %v1779_v50, %v547_v46  ;;  %vm556_vm11 = vweird.f32 %v1779_v50  ;;  %v1711_v46 = vld [vmem:[%s2315_s6 + $0xb8] sm:$0xff] }
 0xa0a   :  { %1780 = vrsqrt.f32 %v548_v51  ;;  %vm557_vm14 = vmor %vm555_vm13, %vm556_vm11  ;;  %vm565_vm4 = vweird.f32 %v548_v51  ;;  %803 = vmatpush.bf16.msrb.mxu3 %v1711_v46 }
 0xa0b   :  { %v551_v53 = vmul.f32 %v1779_v50, %v550_v52 }
 0xa0c   :  { %v764_v21 = vpop.f32.mrf.mxu2 }
 0xa0d   :  { %v552_v54 = vmul.f32 0.5, %v551_v53  ;;  %v765_v44 = vadd.f32 %v764_v21, %v1927_v13  ;;  %v1710_v13 = vld [vmem:[%s2315_s6 + $0xb0] sm:$0xff]  ;;  %v1713_v53 = vld [vmem:[%s2315_s6 + $0xc8] sm:$0xff] }
 0xa0e   :  { %804 = vmatpush.bf16.msrb.mxu3 %v1710_v13  ;;  %835 = vmatpush.bf16.msra.mxu0 %v1713_v53  ;;  %v1748_v53 = vld [vmem:[%s2316_s7 + $0xc] ss:$0 sm:$0xff] }
 0xa0f   :  { %v553_v56 = vsub.f32 1.5, %v552_v54  ;;  %v2113_v49 = vadd.f32 %v1550_v45, %v765_v44 }
 0xa10   :  { %v1781_v57 = vpop.eup %1780 }
 0xa11   :  { %v554_v58 = vmul.f32 %v1779_v50, %v553_v56  ;;  %v560_v59 = vmul.f32 %v1781_v57, %v548_v51  ;;  %vm566_vm15 = vweird.f32 %v1781_v57 }
 0xa12   :  { %vm567_vm5 = vmor %vm565_vm4, %vm566_vm15 }
 0xa13   :  { %v561_v60 = vmul.f32 %v1781_v57, %v560_v59  ;;  %v558_v61 = vsel %vm557_vm14, %v1779_v50, %v554_v58 }
 0xa14   :  { %v569_v1 = vmul.f32 %v558_v61, %v535_v36  ;;  %v1745_v36 = vld [vmem:[%s2316_s7 + $0xb] ss:$0 sm:$0xff]  ;;  %v766_v47 = vpop.f32.mrf.mxu2 }
 0xa15   :  { %v562_v62 = vmul.f32 0.5, %v561_v60  ;;  %v767_v50 = vadd.f32 %v766_v47, %v1932_v14  ;;  %v1712_v14 = vld [vmem:[%s2315_s6 + $0xc0] sm:$0xff] }
 0xa16   :  { %v572_v7 = vmul.f32 %v2067_v0, %v569_v1  ;;  %836 = vmatpush.bf16.msra.mxu0 %v1712_v14 }
 0xa17   :  { %v563_v63 = vsub.f32 1.5, %v562_v62  ;;  %v2119_v51 = vadd.f32 %v1551_v48, %v767_v50  ;;  %v1747_v48 = vld [vmem:[%s2316_s7 + $0x11] ss:$0 sm:$0xff] }
 0xa18   :  { %v575_v12 = vadd.f32 %v2072_v6, %v572_v7 }
 0xa19   :  { %v564_v2 = vmul.f32 %v1781_v57, %v563_v63  ;;  %v2123_v52 = vpack.c.bf16 %v2119_v51, %v2113_v49 }
 0xa1b   :  { %v568_v4 = vsel %vm567_vm5, %v1781_v57, %v564_v2 }
 0xa1c   :  { %v570_v8 = vmul.f32 %v568_v4, %v536_v41  ;;  %v1708_v4 = vld [vmem:[%s2315_s6 + $0x98] sm:$0xff] }
 0xa1d   :  { %729 = vmatpush.bf16.msrb.mxu1 %v1708_v4 }
 0xa1e   :  { %v573_v9 = vmul.f32 %v2067_v0, %v570_v8 }
 0xa20   :  { %v576_v15 = vadd.f32 %v2072_v6, %v573_v9 }
 0xa22   :  { %v581_v16 = vpack.c.bf16 %v576_v15, %v575_v12 }
 0xa24   :  { %1523 = vmatmul.msk.bf16.vlgmr.msra.gmra.mxu3 %vm101_vm2, %v581_v16 }
 0xa34   :  { %1565 = vmatmul.msk.bf16.vlgmr.msrb.gmra.mxu3 %vm101_vm2, %v2123_v52 }
 0xaa7   :  { %v608_v26 = vpop.f32.mrf.mxu3 }
 0xaa8   :  { %v609_v28 = vadd.f32 %v1744_v27, %v608_v26 }
 0xaaa   :  { %v613_v32 = vmax.f32 %v609_v28, 0.0 }
 0xaaf   :  { %v610_v30 = vpop.f32.mrf.mxu3 }
 0xab0   :  { %v611_v31 = vadd.f32 %v1744_v27, %v610_v30 }
 0xab2   :  { %v614_v33 = vmax.f32 %v611_v31, 0.0 }
 0xab4   :  { %v619_v34 = vpack.c.bf16 %v614_v33, %v613_v32 }
 0xab6   :  { %1532 = vmatmul.msk.bf16.vlgmr.msrb.gmra.mxu0 %vm101_vm2, %v619_v34 }
 0xab7   :  { %v806_v2 = vpop.f32.mrf.mxu3 }
 0xabf   :  { %v808_v7 = vpop.f32.mrf.mxu3 }
 0xac6   :  { %1579 = vmatmul.msk.bf16.vlgmr.msra.gmra.mxu0 %vm101_vm2, %v1920_v11  ;;  %v1746_v11 = vld [vmem:[%s2316_s7 + $0x10] ss:$0 sm:$0xff] }
 0xac7   :  { %v807_v8 = vadd.f32 %v1746_v11, %v806_v2  ;;  %v809_v9 = vadd.f32 %v1746_v11, %v808_v7  ;;  %v1720_v7 = vld [vmem:[%s2315_s6 + $0xe0] sm:$0xff] }
 0xb33   :  { %v646_v37 = vpop.f32.mrf.mxu0 }
 0xb34   :  { %v647_v20 = vadd.f32 %v1745_v36, %v646_v37 }
 0xb36   :  { %v651_v5 = vadd.f32 %v647_v20, %v575_v12  ;;  %v843_v12 = vpack.c.bf16 %v809_v9, %v807_v8 }
 0xb38   :  { %v653_v39 = vsel %vm101_vm2, %v651_v5, 0.0  ;;  %v848_v17 = vsel %vm101_vm2, %v843_v12, 0 }
 0xb39   :  { %654 = vadd.xlane.f32.xlu2 %v653_v39 }
 0xb3b   :  { %v648_v40 = vpop.f32.mrf.mxu0 }
 0xb3c   :  { %v649_v41 = vadd.f32 %v1745_v36, %v648_v40 }
 0xb3e   :  { %v652_v42 = vadd.f32 %v649_v41, %v576_v15  ;;  %v1707_v15 = vld [vmem:[%s2315_s6 + $0x90] sm:$0xff] }
 0xb3f   :  { %730 = vmatpush.bf16.msrb.mxu1 %v1707_v15 }
 0xb40   :  { %v656_v43 = vsel %vm101_vm2, %v652_v42, 0.0 }
 0xb41   :  { %657 = vadd.xlane.f32.xlu1 %v656_v43 }
 0xb43   :  { %857 = vmatpush.bf16.xpose.msra.mxu1 %v848_v17  ;;  %v838_v22 = vpop.f32.mrf.mxu0 }
 0xb44   :  { %v839_v50 = vadd.f32 %v1747_v48, %v838_v22 }
 0xb46   :  { %v842_v13 = vpack.c.bf16 %v839_v50, %v839_v50 }
 0xb4b   :  { %v840_v30 = vpop.f32.mrf.mxu0 }
 0xbac   :  { %v655_v54 = vpop.xlane.xlu2 %654 }
 0xbad   :  { %v659_v56 = vmul.f32 %v655_v54, %v1977_v3 }
 0xbaf   :  { %v661_v57 = vsub.f32 %v651_v5, %v659_v56 }
 0xbb1   :  { %v663_v58 = vmul.f32 %v661_v57, %v661_v57 }
 0xbb3   :  { %v665_v59 = vsel %vm101_vm2, %v663_v58, 0.0 }
 0xbb4   :  { %v658_v60 = vpop.xlane.xlu1 %657  ;;  %666 = vadd.xlane.f32.xlu0 %v665_v59 }
 0xbb5   :  { %v660_v61 = vmul.f32 %v658_v60, %v1977_v3 }
 0xbb7   :  { %v662_v62 = vsub.f32 %v652_v42, %v660_v61 }
 0xbb9   :  { %v664_v63 = vmul.f32 %v662_v62, %v662_v62 }
 0xbbb   :  { %v668_v1 = vsel %vm101_vm2, %v664_v63, 0.0 }
 0xbbc   :  { %669 = vadd.xlane.f32.xlu1 %v668_v1 }
 0xc27   :  { %v667_v16 = vpop.xlane.xlu0 %666 }
 0xc28   :  { %v671_v18 = vmul.f32 %v667_v16, %v1977_v3 }
 0xc2a   :  { %v673_v19 = vadd.f32 1e-05, %v671_v18 }
 0xc2c   :  { %1782 = vrsqrt.f32 %v673_v19  ;;  %vm681_vm6 = vweird.f32 %v673_v19 }
 0xc2f   :  { %v670_v23 = vpop.xlane.xlu1 %669 }
 0xc30   :  { %v672_v24 = vmul.f32 %v670_v23, %v1977_v3 }
 0xc32   :  { %v1783_v25 = vpop.eup %1782  ;;  %v674_v26 = vadd.f32 1e-05, %v672_v24 }
 0xc33   :  { %v676_v27 = vmul.f32 %v1783_v25, %v673_v19  ;;  %vm682_vm1 = vweird.f32 %v1783_v25 }
 0xc34   :  { %1784 = vrsqrt.f32 %v674_v26  ;;  %vm683_vm7 = vmor %vm681_vm6, %vm682_vm1  ;;  %vm691_vm9 = vweird.f32 %v674_v26 }
 0xc35   :  { %v677_v28 = vmul.f32 %v1783_v25, %v676_v27 }
 0xc37   :  { %v678_v31 = vmul.f32 0.5, %v677_v28 }
 0xc39   :  { %v679_v32 = vsub.f32 1.5, %v678_v31 }
 0xc3a   :  { %v1785_v33 = vpop.eup %1784 }
 0xc3b   :  { %v680_v34 = vmul.f32 %v1783_v25, %v679_v32  ;;  %v686_v36 = vmul.f32 %v1785_v33, %v674_v26  ;;  %vm692_vm8 = vweird.f32 %v1785_v33 }
 0xc3c   :  { %vm693_vm10 = vmor %vm691_vm9, %vm692_vm8 }
 0xc3d   :  { %v687_v37 = vmul.f32 %v1785_v33, %v686_v36  ;;  %v684_v20 = vsel %vm683_vm7, %v1783_v25, %v680_v34 }
 0xc3e   :  { %v695_v40 = vmul.f32 %v684_v20, %v661_v57 }
 0xc3f   :  { %v688_v5 = vmul.f32 0.5, %v687_v37 }
 0xc40   :  { %v697_v43 = vmul.f32 %v2067_v0, %v695_v40 }
 0xc41   :  { %v689_v39 = vsub.f32 1.5, %v688_v5 }
 0xc42   :  { %v699_v45 = vadd.f32 %v2072_v6, %v697_v43 }
 0xc43   :  { %v690_v41 = vmul.f32 %v1785_v33, %v689_v39  ;;  %v1750_v39 = vld [vmem:[%s2316_s7 + $0x14] ss:$0 sm:$0xff] }
 0xc45   :  { %v694_v42 = vsel %vm693_vm10, %v1785_v33, %v690_v41  ;;  %v1751_v41 = vld [vmem:[%s2316_s7 + $0x15] ss:$0 sm:$0xff] }
 0xc46   :  { %v696_v21 = vmul.f32 %v694_v42, %v662_v62 }
 0xc48   :  { %v698_v44 = vmul.f32 %v2067_v0, %v696_v21 }
 0xc4a   :  { %v700_v46 = vadd.f32 %v2072_v6, %v698_v44 }
 0xc4c   :  { %v705_v47 = vpack.c.bf16 %v700_v46, %v699_v45  ;;  %v1717_v45 = vld [vmem:[%s2315_s6 + $0x108] sm:$0xff]  ;;  %v1716_v46 = vld [vmem:[%s2315_s6 + $0x100] sm:$0xff] }
 0xc4d   :  { %995 = vmatpush.bf16.msrb.mxu0 %v1717_v45 }
 0xc4e   :  { %1541 = vmatmul.msk.bf16.vlgmr.msrb.gmra.mxu1 %vm101_vm2, %v705_v47  ;;  %v1752_v47 = vld [vmem:[%s2316_s7 + $0x18] ss:$0 sm:$0xff] }
 0xc51   :  { %996 = vmatpush.bf16.msrb.mxu0 %v1716_v46 }
 0xc5e   :  { %1580 = vmatmul.msk.bf16.vlgmr.msra.gmra.mxu1 %vm101_vm2, %v842_v13 }
 0xccb   :  { %v732_v0 = vpop.f32.mrf.mxu1 }
 0xccc   :  { %v733_v14 = vadd.f32 %v1748_v53, %v732_v0 }
 0xcce   :  { %737 = vst.msk [vmem:[#allocation2] sm:$0xff] %vm442_vm12, %v733_v14  ;;  %v1753_v14 = vld [vmem:[%s2316_s7 + $0x19] ss:$0 sm:$0xff] }
 0xcd3   :  { %v734_v6 = vpop.f32.mrf.mxu1 }
 0xcd4   :  { %v735_v54 = vadd.f32 %v1748_v53, %v734_v6 }
 0xcd6   :  { %738 = vst.msk [vmem:[#allocation2 + $0x8] sm:$0xff] %vm442_vm12, %v735_v54 }
 0xcdb   :  { %v859_v56 = vpop.f32.mrf.mxu1 }
 0xcdc   :  { %v863_v57 = vmul.f32 0.01, %v859_v56 }
 0xcde   :  { %v864_v58 = vmax.f32 %v859_v56, %v863_v57 }
 0xce0   :  { %v865_v59 = vadd.f32 %v864_v58, %v1961_v38  ;;  %v1721_v38 = vld [vmem:[%s2315_s6 + $0xe8] sm:$0xff] }
 0xce2   :  { %v866_v60 = vsel %vm178_vm3, %v865_v59, -inf }
 0xce3   :  { %867 = vmax.xlane.f32.xlu0 %v866_v60  ;;  %v861_v61 = vpop.f32.mrf.mxu1 }
 0xcf7   :  { %879 = vrot.lane.b32.xlu0 %v843_v12, %s1836_s30 }
 0xd56   :  { %v868_v62 = vpop.xlane.xlu0 %867 }
 0xd57   :  { %v869_v63 = vsub.f32 %v865_v59, %v868_v62  ;;  %vm898_vm11 = vcmp.gt.f32.partialorder %v868_v62, -5e+29 }
 0xd58   :  { %v1582_v17 = vsel %vm898_vm11, 1.0, %v1837_v55 }
 0xd59   :  { %v870_v1 = vmul.f32 1.442695, %v869_v63 }
 0xd5b   :  { %1786 = vpow2.f32 %v870_v1  ;;  %v1719_v1 = vld [vmem:[%s2315_s6 + $0xd8] sm:$0xff] }
 0xd5c   :  { %1055 = vmatpush.bf16.msrb.mxu1 %v1719_v1 }
 0xd61   :  { %v1787_v2 = vpop.eup %1786 }
 0xd62   :  { %v872_v11 = vsel %vm178_vm3, %v1787_v2, 0.0 }
 0xd63   :  { %873 = vadd.xlane.f32.xlu1 %v872_v11 }
 0xd69   :  { %v880_v4 = vpop.permute.xlu0 %879 }
 0xd6a   :  { %892 = vmatpush.bf16.msra.mxu2 %v880_v4 }
 0xd6e   :  { %1086 = vmatpush.bf16.msrb.mxu2 %v1721_v38 }
 0xd72   :  { %1087 = vmatpush.bf16.msrb.mxu2 %v1720_v7 }
 0xdd6   :  { %v874_v8 = vpop.xlane.xlu1 %873 }
 0xdd7   :  { %1788 = vrcp.f32 %v874_v8 }
 0xddd   :  { %v1789_v9 = vpop.eup %1788 }
 0xdde   :  { %v876_v12 = vmul.f32 %v1789_v9, %v1787_v2  ;;  %v1718_v2 = vld [vmem:[%s2315_s6 + $0xd0] sm:$0xff] }
 0xddf   :  { %1056 = vmatpush.bf16.msrb.mxu1 %v1718_v2 }
 0xde0   :  { %v877_v15 = vpack.c.bf16 %v876_v12, %v876_v12 }
 0xde2   :  { %1581 = vmatmul.msk.bf16.vlgmr.msra.gmra.mxu2 %vm178_vm3, %v877_v15 }
 0xdf2   :  { %1640 = vmatmul.msk.bf16.vlgmr.msrb.gmra.mxu2 %vm101_vm2, %v2123_v52  ;;  %v1715_v52 = vld [vmem:[%s2315_s6 + $0xf8] sm:$0xff] }
 0xdf3   :  { %959 = vmatpush.bf16.msra.mxu3 %v1715_v52 }
 0xe65   :  { %v894_v16 = vpop.f32.mrf.mxu2 }
 0xe66   :  { %v901_v18 = vmul.f32 %v1582_v17, %v894_v16 }
 0xe68   :  { %v904_v19 = vadd.f32 %v901_v18, %v1916_v10  ;;  %v1714_v10 = vld [vmem:[%s2315_s6 + $0xf0] sm:$0xff] }
 0xe69   :  { %960 = vmatpush.bf16.msra.mxu3 %v1714_v10  ;;  %v1749_v10 = vld [vmem:[%s2316_s7 + $0x13] ss:$0 sm:$0xff] }
 0xe6a   :  { %v905_v22 = vsel %vm101_vm2, %v904_v19, 0.0 }
 0xe6b   :  { %906 = vadd.xlane.f32.xlu1 %v905_v22 }
 0xe6d   :  { %v896_v23 = vpop.f32.mrf.mxu2 }
 0xede   :  { %v907_v24 = vpop.xlane.xlu1 %906 }
 0xedf   :  { %v908_v25 = vmul.f32 %v907_v24, %v1977_v3  ;;  %v1089_v24 = vpop.f32.mrf.mxu2 }
 0xee1   :  { %v909_v26 = vsub.f32 %v904_v19, %v908_v25  ;;  %v1754_v25 = vld [vmem:[%s2316_s7 + $0x12] ss:$0 sm:$0xff] }
 0xee3   :  { %v910_v27 = vmul.f32 %v909_v26, %v909_v26 }
 0xee5   :  { %v911_v28 = vsel %vm101_vm2, %v910_v27, 0.0 }
 0xee6   :  { %912 = vadd.xlane.f32.xlu1 %v911_v28 }
 0xee7   :  { %v1091_v52 = vpop.f32.mrf.mxu2 }
 0xf59   :  { %v913_v30 = vpop.xlane.xlu1 %912 }
 0xf5a   :  { %v914_v31 = vmul.f32 %v913_v30, %v1977_v3 }
 0xf5c   :  { %v915_v32 = vadd.f32 1e-05, %v914_v31  ;;  %v1092_v31 = vadd.f32 %v1749_v10, %v1091_v52 }
 0xf5e   :  { %1790 = vrsqrt.f32 %v915_v32  ;;  %vm922_vm13 = vweird.f32 %v915_v32 }
 0xf64   :  { %v1791_v33 = vpop.eup %1790 }
 0xf65   :  { %v917_v34 = vmul.f32 %v1791_v33, %v915_v32  ;;  %vm923_vm3 = vweird.f32 %v1791_v33 }
 0xf66   :  { %vm924_vm14 = vmor %vm922_vm13, %vm923_vm3 }
 0xf67   :  { %v918_v36 = vmul.f32 %v1791_v33, %v917_v34 }
 0xf69   :  { %v919_v37 = vmul.f32 0.5, %v918_v36 }
 0xf6b   :  { %v920_v20 = vsub.f32 1.5, %v919_v37 }
 0xf6d   :  { %v921_v5 = vmul.f32 %v1791_v33, %v920_v20 }
 0xf6f   :  { %v925_v40 = vsel %vm924_vm14, %v1791_v33, %v921_v5  ;;  %v1090_v33 = vadd.f32 %v1749_v10, %v1089_v24 }
 0xf70   :  { %v926_v42 = vmul.f32 %v925_v40, %v909_v26 }
 0xf71   :  { %v1094_v34 = vpack.c.bf16 %v1092_v31, %v1090_v33 }
 0xf72   :  { %v928_v43 = vmul.f32 %v1750_v39, %v926_v42 }
 0xf74   :  { %v930_v21 = vadd.f32 %v1751_v41, %v928_v43 }
 0xf76   :  { %v935_v44 = vpack.c.bf16 %v930_v21, %v930_v21 }
 0xf78   :  { %1598 = vmatmul.msk.bf16.vlgmr.msra.gmra.mxu3 %vm101_vm2, %v935_v44 }
 0xffb   :  { %v962_v48 = vpop.f32.mrf.mxu3 }
 0xffc   :  { %v963_v50 = vadd.f32 %v1752_v47, %v962_v48 }
 0xffe   :  { %v966_v13 = vmax.f32 %v963_v50, 0.0 }
0x1000   :  { %v971_v53 = vpack.c.bf16 %v966_v13, %v966_v13 }
0x1002   :  { %1612 = vmatmul.msk.bf16.vlgmr.msrb.gmra.mxu0 %vm101_vm2, %v971_v53 }
0x1003   :  { %v964_v0 = vpop.f32.mrf.mxu3 }
0x107f   :  { %v998_v6 = vpop.f32.mrf.mxu0 }
0x1080   :  { %v999_v54 = vadd.f32 %v1753_v14, %v998_v6 }
0x1082   :  { %v1002_v56 = vadd.f32 %v999_v54, %v930_v21 }
0x1084   :  { %v1003_v57 = vsel %vm101_vm2, %v1002_v56, 0.0 }
0x1085   :  { %1004 = vadd.xlane.f32.xlu2 %v1003_v57 }
0x1087   :  { %v1000_v58 = vpop.f32.mrf.mxu0 }
0x10f8   :  { %v1005_v59 = vpop.xlane.xlu2 %1004 }
0x10f9   :  { %v1006_v60 = vmul.f32 %v1005_v59, %v1977_v3 }
0x10fb   :  { %v1007_v61 = vsub.f32 %v1002_v56, %v1006_v60 }
0x10fd   :  { %v1008_v62 = vmul.f32 %v1007_v61, %v1007_v61 }
0x10ff   :  { %v1009_v63 = vsel %vm101_vm2, %v1008_v62, 0.0 }
0x1100   :  { %1010 = vadd.xlane.f32.xlu1 %v1009_v63 }
0x1173   :  { %v1011_v11 = vpop.xlane.xlu1 %1010 }
0x1174   :  { %v1012_v4 = vmul.f32 %v1011_v11, %v1977_v3 }
0x1176   :  { %v1013_v38 = vadd.f32 1e-05, %v1012_v4 }
0x1178   :  { %1792 = vrsqrt.f32 %v1013_v38  ;;  %vm1020_vm4 = vweird.f32 %v1013_v38 }
0x117e   :  { %v1793_v7 = vpop.eup %1792 }
0x117f   :  { %v1015_v8 = vmul.f32 %v1793_v7, %v1013_v38  ;;  %vm1021_vm15 = vweird.f32 %v1793_v7 }
0x1180   :  { %vm1022_vm5 = vmor %vm1020_vm4, %vm1021_vm15 }
0x1181   :  { %v1016_v9 = vmul.f32 %v1793_v7, %v1015_v8 }
0x1183   :  { %v1017_v12 = vmul.f32 0.5, %v1016_v9 }
0x1185   :  { %v1018_v15 = vsub.f32 1.5, %v1017_v12 }
0x1187   :  { %v1019_v16 = vmul.f32 %v1793_v7, %v1018_v15 }
0x1189   :  { %v1023_v17 = vsel %vm1022_vm5, %v1793_v7, %v1019_v16 }
0x118a   :  { %v1024_v18 = vmul.f32 %v1023_v17, %v1007_v61 }
0x118c   :  { %v1025_v19 = vmul.f32 %v1750_v39, %v1024_v18 }
0x118e   :  { %v1026_v22 = vadd.f32 %v1751_v41, %v1025_v19 }
0x1190   :  { %v1031_v23 = vpack.c.bf16 %v1026_v22, %v1026_v22 }
0x1192   :  { %1626 = vmatmul.msk.bf16.vlgmr.msrb.gmra.mxu1 %vm101_vm2, %v1031_v23 }
0x120f   :  { %v1058_v26 = vpop.f32.mrf.mxu1 }
0x1210   :  { %v1059_v27 = vadd.f32 %v1754_v25, %v1058_v26 }
0x1212   :  { %v1095_v28 = vpack.c.bf16 %v1059_v27, %v1059_v27 }
0x1214   :  { %v1100_v30 = vsel %vm101_vm2, %v1095_v28, 0 }
0x1215   :  { %1109 = vmatpush.bf16.xpose.msrb.mxu3 %v1100_v30 }
0x1217   :  { %v1060_v32 = vpop.f32.mrf.mxu1 }
0x121c   :  { %1641 = vmatmul.msk.bf16.vlgmr.msrb.gmra.mxu3 %vm101_vm2, %v1094_v34 }
0x129f   :  { %v1111_v36 = vpop.f32.mrf.mxu3 }
0x12a0   :  { %v1116_v37 = vmul.f32 0.01, %v1111_v36 }
0x12a2   :  { %v1118_v20 = vmax.f32 %v1111_v36, %v1116_v37 }
0x12a4   :  { %v1120_v5 = vadd.f32 %v1118_v20, %v2030_v29 }
0x12a6   :  { %v1122_v39 = vsel %vm442_vm12, %v1120_v5, -inf }
0x12a7   :  { %1123 = vmax.xlane.f32.xlu0 %v1122_v39  ;;  %v1113_v40 = vpop.f32.mrf.mxu3 }
0x12a8   :  { %v1117_v41 = vmul.f32 0.01, %v1113_v40 }
0x12aa   :  { %v1119_v42 = vmax.f32 %v1113_v40, %v1117_v41 }
0x12ac   :  { %v1121_v43 = vadd.f32 %v1119_v42, %v2037_v35 }
0x12ae   :  { %v1125_v21 = vsel %vm442_vm12, %v1121_v43, -inf }
0x12af   :  { %1126 = vmax.xlane.f32.xlu2 %v1125_v21 }
0x131a   :  { %v1124_v44 = vpop.xlane.xlu0 %1123 }
0x131b   :  { %v1128_v45 = vsub.f32 %v1120_v5, %v1124_v44  ;;  %vm1194_vm13 = vcmp.gt.f32.partialorder %v1124_v44, -5e+29 }
0x131c   :  { %v1643_v24 = vsel %vm1194_vm13, 1.0, %v1837_v55 }
0x131d   :  { %v1130_v46 = vmul.f32 1.442695, %v1128_v45 }
0x131f   :  { %1794 = vpow2.f32 %v1130_v46 }
0x1322   :  { %v1127_v47 = vpop.xlane.xlu2 %1126 }
0x1323   :  { %v1129_v48 = vsub.f32 %v1121_v43, %v1127_v47  ;;  %vm1195_vm14 = vcmp.gt.f32.partialorder %v1127_v47, -5e+29  ;;  %v1722_v43 = vld [vmem:[%s2315_s6 + $0x110] sm:$0xff] }
0x1324   :  { %v1644_v52 = vsel %vm1195_vm14, 1.0, %v1837_v55 }
0x1325   :  { %v1795_v50 = vpop.eup %1794  ;;  %v1132_v13 = vmul.f32 1.442695, %v1129_v48 }
0x1326   :  { %v1134_v29 = vsel %vm442_vm12, %v1795_v50, 0.0 }
0x1327   :  { %1796 = vpow2.f32 %v1132_v13  ;;  %1135 = vadd.xlane.f32.xlu1 %v1134_v29 }
0x132d   :  { %v1797_v53 = vpop.eup %1796 }
0x132e   :  { %v1137_v0 = vsel %vm442_vm12, %v1797_v53, 0.0 }
0x132f   :  { %1138 = vadd.xlane.f32.xlu2 %v1137_v0 }
0x1340   :  { %1172 = vrot.lane.b32.xlu1 %v1095_v28, %s1836_s30 }
0x139a   :  { %v1136_v35 = vpop.xlane.xlu1 %1135 }
0x139b   :  { %1798 = vrcp.f32 %v1136_v35  ;;  %v1151_v61 = vand.u32 2147483648, %v1136_v35  ;;  %vm1145_vm6 = vweird.f32 %v1136_v35  ;;  %v1149_v62 = vand.u32 2147483647, %v1136_v35 }
0x139d   :  { %v1152_v38 = vor.u32 1.1754944e-38, %v1151_v61  ;;  %vm1150_vm9 = vcmp.eq.f32.partialorder %v1149_v62, 8.507059e+37 }
0x13a1   :  { %v1799_v14 = vpop.eup %1798 }
0x13a2   :  { %v1141_v6 = vmul.f32 %v1799_v14, %v1136_v35  ;;  %v1139_v54 = vpop.xlane.xlu2 %1138  ;;  %vm1146_vm1 = vweird.f32 %v1799_v14 }
0x13a3   :  { %1800 = vrcp.f32 %v1139_v54  ;;  %vm1147_vm7 = vmor %vm1145_vm6, %vm1146_vm1  ;;  %v1165_v1 = vand.u32 2147483648, %v1139_v54  ;;  %v1163_v4 = vand.u32 2147483647, %v1139_v54  ;;  %vm1159_vm10 = vweird.f32 %v1139_v54 }
0x13a4   :  { %v1142_v56 = vsub.f32 1.0, %v1141_v6 }
0x13a5   :  { %v1166_v9 = vor.u32 1.1754944e-38, %v1165_v1  ;;  %vm1164_vm3 = vcmp.eq.f32.partialorder %v1163_v4, 8.507059e+37  ;;  %v1725_v4 = vld [vmem:[%s2315_s6 + $0x128] sm:$0xff] }
0x13a6   :  { %v1143_v57 = vmul.f32 %v1799_v14, %v1142_v56  ;;  %v2259_v56 = vld [vmem:[%s2316_s7 + $0x16] ss:$0 sm:$0xff]  ;;  %1322 = vmatpush.bf16.msra.mxu2 %v1725_v4 }
0x13a8   :  { %v1144_v59 = vadd.f32 %v1799_v14, %v1143_v57 }
0x13a9   :  { %v1801_v58 = vpop.eup %1800 }
0x13aa   :  { %v1155_v60 = vmul.f32 %v1801_v58, %v1139_v54  ;;  %v1148_v2 = vsel %vm1147_vm7, %v1799_v14, %v1144_v59  ;;  %vm1160_vm8 = vweird.f32 %v1801_v58 }
0x13ab   :  { %v1153_v8 = vsel %vm1150_vm9, %v1152_v38, %v1148_v2  ;;  %vm1161_vm11 = vmor %vm1159_vm10, %vm1160_vm8  ;;  %v1724_v38 = vld [vmem:[%s2315_s6 + $0x120] sm:$0xff] }
0x13ac   :  { %v1156_v63 = vsub.f32 1.0, %v1155_v60  ;;  %v1168_v18 = vmul.f32 %v1795_v50, %v1153_v8  ;;  %v2264_v60 = vld [vmem:[%s2316_s7 + $0x17] ss:$0 sm:$0xff]  ;;  %1323 = vmatpush.bf16.msra.mxu2 %v1724_v38  ;;  %v1757_v8 = vld [vmem:[%s2316_s7 + $0x1a] ss:$0 sm:$0xff] }
0x13ae   :  { %v1157_v11 = vmul.f32 %v1801_v58, %v1156_v63 }
0x13b0   :  { %v1158_v7 = vadd.f32 %v1801_v58, %v1157_v11 }
0x13b2   :  { %v1162_v12 = vsel %vm1161_vm11, %v1801_v58, %v1158_v7  ;;  %v1173_v15 = vpop.permute.xlu1 %1172 }
0x13b3   :  { %v1167_v16 = vsel %vm1164_vm3, %v1166_v9, %v1162_v12  ;;  %v1178_v17 = vsel %vm60_vm0, %v1173_v15, 0  ;;  %vm1424_vm3 = vcmask 130112  }
0x13b4   :  { %v1169_v19 = vmul.f32 %v1797_v53, %v1167_v16  ;;  %1187 = vmatpush.bf16.msra.mxu0 %v1178_v17 }
0x13b6   :  { %v1170_v22 = vpack.c.bf16 %v1169_v19, %v1168_v18  ;;  %v1758_v19 = vld [vmem:[%s2316_s7 + $0x1b] ss:$0 sm:$0xff] }
0x13b8   :  { %1642 = vmatmul.msk.bf16.vlgmr.msra.gmra.mxu0 %vm442_vm12, %v1170_v22 }
0x1435   :  { %v1189_v23 = vpop.f32.mrf.mxu0 }
0x1436   :  { %v1200_v25 = vmul.f32 %v1643_v24, %v1189_v23 }
0x1438   :  { %v1204_v26 = vadd.f32 %v1200_v25, %v2113_v49 }
0x143a   :  { %v1206_v27 = vsel %vm101_vm2, %v1204_v26, 0.0 }
0x143b   :  { %1207 = vadd.xlane.f32.xlu2 %v1206_v27 }
0x143d   :  { %v1191_v28 = vpop.f32.mrf.mxu0 }
0x143e   :  { %v1201_v10 = vmul.f32 %v1644_v52, %v1191_v28 }
0x1440   :  { %v1205_v30 = vadd.f32 %v1201_v10, %v2119_v51  ;;  %v1723_v51 = vld [vmem:[%s2315_s6 + $0x118] sm:$0xff] }
0x1441   :  { %1284 = vmatpush.bf16.msra.mxu1 %v1723_v51 }
0x1442   :  { %v1209_v31 = vsel %vm101_vm2, %v1205_v30, 0.0 }
0x1443   :  { %1210 = vadd.xlane.f32.xlu2 %v1209_v31 }
0x1445   :  { %1285 = vmatpush.bf16.msra.mxu1 %v1722_v43 }
0x14ae   :  { %v1208_v32 = vpop.xlane.xlu2 %1207 }
0x14af   :  { %v1212_v33 = vmul.f32 %v1208_v32, %v1977_v3 }
0x14b1   :  { %v1214_v34 = vsub.f32 %v1204_v26, %v1212_v33 }
0x14b3   :  { %v1216_v36 = vmul.f32 %v1214_v34, %v1214_v34 }
0x14b5   :  { %v1218_v49 = vsel %vm101_vm2, %v1216_v36, 0.0 }
0x14b6   :  { %1219 = vadd.xlane.f32.xlu2 %v1218_v49  ;;  %v1211_v37 = vpop.xlane.xlu2 %1210 }
0x14b7   :  { %v1213_v20 = vmul.f32 %v1211_v37, %v1977_v3 }
0x14b9   :  { %v1215_v5 = vsub.f32 %v1205_v30, %v1213_v20 }
0x14bb   :  { %v1217_v39 = vmul.f32 %v1215_v5, %v1215_v5 }
0x14bd   :  { %v1221_v55 = vsel %vm101_vm2, %v1217_v39, 0.0 }
0x14be   :  { %1222 = vadd.xlane.f32.xlu1 %v1221_v55 }
0x1529   :  { %v1220_v40 = vpop.xlane.xlu2 %1219 }
0x152a   :  { %v1224_v41 = vmul.f32 %v1220_v40, %v1977_v3  ;;  %v1726_v40 = vld [vmem:[%s2315_s6 + $0x130] sm:$0xff] }
0x152c   :  { %v1226_v42 = vadd.f32 1e-05, %v1224_v41 }
0x152e   :  { %1802 = vrsqrt.f32 %v1226_v42  ;;  %vm1234_vm12 = vweird.f32 %v1226_v42 }
0x1531   :  { %v1223_v21 = vpop.xlane.xlu1 %1222 }
0x1532   :  { %v1225_v44 = vmul.f32 %v1223_v21, %v1977_v3 }
0x1534   :  { %v1803_v45 = vpop.eup %1802  ;;  %v1227_v46 = vadd.f32 1e-05, %v1225_v44 }
0x1535   :  { %v1229_v47 = vmul.f32 %v1803_v45, %v1226_v42  ;;  %vm1235_vm0 = vweird.f32 %v1803_v45 }
0x1536   :  { %1804 = vrsqrt.f32 %v1227_v46  ;;  %vm1236_vm15 = vmor %vm1234_vm12, %vm1235_vm0  ;;  %vm1244_vm5 = vweird.f32 %v1227_v46 }
0x1537   :  { %v1230_v48 = vmul.f32 %v1803_v45, %v1229_v47 }
0x1539   :  { %v1231_v50 = vmul.f32 0.5, %v1230_v48 }
0x153b   :  { %v1232_v13 = vsub.f32 1.5, %v1231_v50 }
0x153c   :  { %v1805_v29 = vpop.eup %1804 }
0x153d   :  { %v1233_v53 = vmul.f32 %v1803_v45, %v1232_v13  ;;  %v1239_v0 = vmul.f32 %v1805_v29, %v1227_v46  ;;  %vm1245_vm4 = vweird.f32 %v1805_v29 }
0x153e   :  { %vm1246_vm1 = vmor %vm1244_vm5, %vm1245_vm4 }
0x153f   :  { %v1240_v35 = vmul.f32 %v1805_v29, %v1239_v0  ;;  %v1237_v14 = vsel %vm1236_vm15, %v1803_v45, %v1233_v53 }
0x1540   :  { %v1248_v57 = vmul.f32 %v1237_v14, %v1214_v34 }
0x1541   :  { %v1241_v6 = vmul.f32 0.5, %v1240_v35 }
0x1542   :  { %v1251_v61 = vmul.f32 %v2259_v56, %v1248_v57 }
0x1543   :  { %v1242_v54 = vsub.f32 1.5, %v1241_v6 }
0x1544   :  { %v1254_v1 = vadd.f32 %v2264_v60, %v1251_v61 }
0x1545   :  { %v1243_v58 = vmul.f32 %v1805_v29, %v1242_v54 }
0x1547   :  { %v1247_v59 = vsel %vm1246_vm1, %v1805_v29, %v1243_v58 }
0x1548   :  { %v1249_v62 = vmul.f32 %v1247_v59, %v1215_v5  ;;  %v1727_v5 = vld [vmem:[%s2315_s6 + $0x138] sm:$0xff] }
0x1549   :  { %1408 = vmatpush.bf16.msra.mxu3 %v1727_v5 }
0x154a   :  { %v1252_v63 = vmul.f32 %v2259_v56, %v1249_v62 }
0x154c   :  { %v1255_v2 = vadd.f32 %v2264_v60, %v1252_v63  ;;  %v1759_v63 = vld [vmem:[%s2316_s7 + $0x1c] ss:$0 sm:$0xff]  ;;  %s1841_s7 = smov 128  }
0x154d   :  { %1409 = vmatpush.bf16.msra.mxu3 %v1726_v40 }
0x154e   :  { %v1260_v11 = vpack.c.bf16 %v1255_v2, %v1254_v1 }
0x1550   :  { %1660 = vmatmul.msk.bf16.vlgmr.msra.gmra.mxu1 %vm101_vm2, %v1260_v11 }
0x15cd   :  { %v1287_v7 = vpop.f32.mrf.mxu1 }
0x15ce   :  { %v1288_v9 = vadd.f32 %v1757_v8, %v1287_v7 }
0x15d0   :  { %v1292_v16 = vmax.f32 %v1288_v9, 0.0 }
0x15d5   :  { %v1289_v12 = vpop.f32.mrf.mxu1 }
0x15d6   :  { %v1290_v15 = vadd.f32 %v1757_v8, %v1289_v12 }
0x15d8   :  { %v1293_v17 = vmax.f32 %v1290_v15, 0.0 }
0x15da   :  { %v1298_v18 = vpack.c.bf16 %v1293_v17, %v1292_v16 }
0x15dc   :  { %1674 = vmatmul.msk.bf16.vlgmr.msra.gmra.mxu2 %vm101_vm2, %v1298_v18 }
0x165f   :  { %v1325_v22 = vpop.f32.mrf.mxu2 }
0x1660   :  { %v1326_v23 = vadd.f32 %v1758_v19, %v1325_v22 }
0x1662   :  { %v1330_v24 = vadd.f32 %v1326_v23, %v1254_v1 }
0x1664   :  { %v1332_v25 = vsel %vm101_vm2, %v1330_v24, 0.0 }
0x1665   :  { %1333 = vadd.xlane.f32.xlu0 %v1332_v25 }
0x1667   :  { %v1327_v26 = vpop.f32.mrf.mxu2 }
0x1668   :  { %v1328_v27 = vadd.f32 %v1758_v19, %v1327_v26 }
0x166a   :  { %v1331_v28 = vadd.f32 %v1328_v27, %v1255_v2 }
0x166c   :  { %v1335_v52 = vsel %vm101_vm2, %v1331_v28, 0.0 }
0x166d   :  { %1336 = vadd.xlane.f32.xlu2 %v1335_v52 }
0x16d8   :  { %v1334_v10 = vpop.xlane.xlu0 %1333 }
0x16d9   :  { %v1338_v30 = vmul.f32 %v1334_v10, %v1977_v3 }
0x16db   :  { %v1340_v31 = vsub.f32 %v1330_v24, %v1338_v30 }
0x16dd   :  { %v1342_v32 = vmul.f32 %v1340_v31, %v1340_v31 }
0x16df   :  { %v1344_v33 = vsel %vm101_vm2, %v1342_v32, 0.0 }
0x16e0   :  { %v1337_v34 = vpop.xlane.xlu2 %1336  ;;  %1345 = vadd.xlane.f32.xlu0 %v1344_v33 }
0x16e1   :  { %v1339_v36 = vmul.f32 %v1337_v34, %v1977_v3 }
0x16e3   :  { %v1341_v49 = vsub.f32 %v1331_v28, %v1339_v36 }
0x16e5   :  { %v1343_v37 = vmul.f32 %v1341_v49, %v1341_v49 }
0x16e7   :  { %v1347_v20 = vsel %vm101_vm2, %v1343_v37, 0.0 }
0x16e8   :  { %1348 = vadd.xlane.f32.xlu2 %v1347_v20 }
0x1753   :  { %v1346_v39 = vpop.xlane.xlu0 %1345 }
0x1754   :  { %v1350_v55 = vmul.f32 %v1346_v39, %v1977_v3 }
0x1756   :  { %v1352_v51 = vadd.f32 1e-05, %v1350_v55 }
0x1758   :  { %1806 = vrsqrt.f32 %v1352_v51  ;;  %vm1360_vm7 = vweird.f32 %v1352_v51 }
0x175b   :  { %v1349_v41 = vpop.xlane.xlu2 %1348 }
0x175c   :  { %v1351_v42 = vmul.f32 %v1349_v41, %v1977_v3 }
0x175e   :  { %v1807_v43 = vpop.eup %1806  ;;  %v1353_v21 = vadd.f32 1e-05, %v1351_v42 }
0x175f   :  { %v1355_v44 = vmul.f32 %v1807_v43, %v1352_v51  ;;  %vm1361_vm6 = vweird.f32 %v1807_v43 }
0x1760   :  { %1808 = vrsqrt.f32 %v1353_v21  ;;  %vm1362_vm8 = vmor %vm1360_vm7, %vm1361_vm6  ;;  %vm1370_vm10 = vweird.f32 %v1353_v21 }
0x1761   :  { %v1356_v45 = vmul.f32 %v1807_v43, %v1355_v44 }
0x1763   :  { %v1357_v46 = vmul.f32 0.5, %v1356_v45 }
0x1765   :  { %v1358_v47 = vsub.f32 1.5, %v1357_v46 }
0x1766   :  { %v1809_v48 = vpop.eup %1808 }
0x1767   :  { %v1359_v50 = vmul.f32 %v1807_v43, %v1358_v47  ;;  %v1365_v13 = vmul.f32 %v1809_v48, %v1353_v21  ;;  %vm1371_vm9 = vweird.f32 %v1809_v48 }
0x1768   :  { %vm1372_vm11 = vmor %vm1370_vm10, %vm1371_vm9 }
0x1769   :  { %v1366_v29 = vmul.f32 %v1809_v48, %v1365_v13  ;;  %v1363_v53 = vsel %vm1362_vm8, %v1807_v43, %v1359_v50 }
0x176a   :  { %v1374_v14 = vmul.f32 %v1363_v53, %v1340_v31 }
0x176b   :  { %v1367_v0 = vmul.f32 0.5, %v1366_v29 }
0x176c   :  { %v1376_v54 = vmul.f32 %v2259_v56, %v1374_v14 }
0x176d   :  { %v1368_v35 = vsub.f32 1.5, %v1367_v0 }
0x176e   :  { %v1378_v59 = vadd.f32 %v2264_v60, %v1376_v54 }
0x176f   :  { %v1369_v3 = vmul.f32 %v1809_v48, %v1368_v35 }
0x1771   :  { %v1373_v6 = vsel %vm1372_vm11, %v1809_v48, %v1369_v3 }
0x1772   :  { %v1375_v57 = vmul.f32 %v1373_v6, %v1341_v49 }
0x1774   :  { %v1377_v58 = vmul.f32 %v2259_v56, %v1375_v57 }
0x1776   :  { %v1379_v61 = vadd.f32 %v2264_v60, %v1377_v58 }
0x1778   :  { %v1384_v62 = vpack.c.bf16 %v1379_v61, %v1378_v59 }
0x177a   :  { %1688 = vmatmul.msk.bf16.vlgmr.msra.gmra.mxu3 %vm101_vm2, %v1384_v62 }
0x17fd   :  { %v1411_v1 = vpop.f32.mrf.mxu3 }
0x17fe   :  { %v1412_v2 = vadd.f32 %v1759_v63, %v1411_v1 }
0x1800   :  { %1418 = vrot.lane.b32.xlu0 %v1412_v2, %s1839_s1 }
0x1805   :  { %v1413_v11 = vpop.f32.mrf.mxu3 }
0x1806   :  { %v1414_v4 = vadd.f32 %v1759_v63, %v1413_v11 }
0x1808   :  { %1420 = vrot.lane.b32.xlu2 %v1414_v4, %s1839_s1 }
0x1862   :  { %v1421_v56 = vpop.permute.xlu2 %1420 }
0x1863   :  { %1426 = vst.msk [vmem:[#allocation2 + $0x8] sm:$0xff] %vm1424_vm3, %v1421_v56 }
0x1872   :  { %v1419_v60 = vpop.permute.xlu0 %1418 }
0x1873   :  { %1425 = vst.msk [vmem:[#allocation2] sm:$0xff] %vm1424_vm3, %v1419_v60 }
0x1874   :  { %1439 = dma.vmem_to_hbm [thread:$0]  %s1432_s25, 256, %s1434_s27, [#allocation3], %s1841_s7, %s1841_s7, %s1839_s1  }
0x1875   :  { %1834 = dma.done.wait [#allocation3], 256  }
0x1876   :  { %1835 = vsyncadd [#allocation3], 4294967040 }
0x1877   :  { %1444 = vsyncpa [#allocation3], 1 }

</bundles_post_ra>
